<compile_context>
chip_gen: v6e
topology: v6e:2x2x1
jax: 0.10.0
libtpu: 0.0.40
codegen_flags: <defaults>
</compile_context>

<pallas_src>
import math

import jax
import jax.numpy as jnp
from jax import lax
from jax.experimental import pallas as pl
from jax.experimental.pallas import tpu as pltpu


# ----------------------------- layout helpers -------------------------------

def _round_up(x, m):
    return ((x + m - 1) // m) * m


def _pad_rows(x, d, dp):
    """Pad the leading (contraction) dim of x from d to dp with zeros."""
    if dp == d:
        return x
    return jnp.concatenate(
        [x, jnp.zeros((dp - d,) + x.shape[1:], x.dtype)], axis=0)


def _pad_gate_cols(x, d, dp):
    """(..., 4*d) -> (..., 4*dp): each gate block k lands at [k*dp, k*dp+d)."""
    if dp == d:
        return x
    pad_shape = x.shape[:-1] + (dp - d,)
    blocks = []
    for k in range(4):
        blocks.append(x[..., k * d:(k + 1) * d])
        blocks.append(jnp.zeros(pad_shape, x.dtype))
    return jnp.concatenate(blocks, axis=-1)


def _nbytes(shape, dtype):
    return math.prod(shape) * jnp.dtype(dtype).itemsize


# -------------------------------- kernel ------------------------------------

def decoder_kernel(g0_ref, wsum_ref, b_ref, wfc_ref, bfc_ref, out_ref, hs_ref):
    T, B, Dp = hs_ref.shape
    M = out_ref.shape[2]

    # ---- Hoisted, loop-invariant loads / broadcasts ----
    wsum = wsum_ref[...]                                    # (Dp, 4Dp) bf16
    b_full = jnp.broadcast_to(b_ref[...], (B, 4 * Dp))      # (B, 4Dp) f32

    def lstm_update(gates, c):
        # PyTorch LSTMCell gate order: i, f, g, o.  Slices are whole 128-lane
        # tiles (Dp is a multiple of 128), so no cross-lane rotates on the
        # serial chain.  Elementwise math in f32.
        i_g = jax.nn.sigmoid(gates[:, 0 * Dp:1 * Dp])
        f_g = jax.nn.sigmoid(gates[:, 1 * Dp:2 * Dp])
        g_g = jnp.tanh(gates[:, 2 * Dp:3 * Dp])
        o_g = jax.nn.sigmoid(gates[:, 3 * Dp:4 * Dp])
        c_new = f_g * c + i_g * g_g
        h_new = o_g * jnp.tanh(c_new)
        return h_new, c_new

    # ---- t = 0: gates0 = enc @ W_hh^T + b was precomputed in the wrapper ----
    h, c = lstm_update(g0_ref[...], jnp.zeros((B, Dp), jnp.float32))
    h_bf = h.astype(jnp.bfloat16)       # cast once; reused by matmul and FC
    hs_ref[0] = h_bf

    # ---- t >= 1: x_t == h_{t-1}  ->  gates = h_bf @ (W_ih+W_hh)^T + b ----
    def body(t, carry):
        h_prev_bf, c_prev = carry
        gates = jnp.dot(h_prev_bf, wsum,
                        preferred_element_type=jnp.float32) + b_full
        h_new, c_new = lstm_update(gates, c_prev)
        h_new_bf = h_new.astype(jnp.bfloat16)
        hs_ref[t] = h_new_bf            # off the serial h/c chain
        return h_new_bf, c_new

    if T > 1:
        unroll = (T - 1) if (T - 1) <= 16 else 8
        lax.fori_loop(1, T, body, (h_bf, c), unroll=unroll)

    # ---- Deferred fc + sigmoid: one batched MXU pass + single writeback ----
    hs = hs_ref[...]                                           # (T, B, Dp) bf16
    wfc_b = jnp.broadcast_to(wfc_ref[...][None, :, :], (T, Dp, M))   # bf16
    y = jnp.einsum("tbd,tdm->tbm", hs, wfc_b,
                   preferred_element_type=jnp.float32)
    y = jax.nn.sigmoid(y + jnp.broadcast_to(bfc_ref[...], (T, B, M)))
    out_ref[...] = y.astype(out_ref.dtype)


# -------------------------------- wrapper ------------------------------------

def decoder_forward(encoding, target_length, params):
    B, D = encoding.shape
    Dp, M = params["w_fc_p"].shape
    T = int(target_length)   # static length required (matches torch while-loop)
    if T < 1:
        raise ValueError("target_length must be >= 1")

    # Prologue in plain XLA (f32): step-0 gates.  This drops W_hh from the
    # kernel entirely (half the resident/DMA'd weight bytes).
    gates0 = encoding.astype(jnp.float32) @ params["w_hh_t_f32"] + params["b_f32"]
    gates0_p = _pad_gate_cols(gates0, D, Dp)                   # (B, 4Dp) f32

    resident = (_nbytes((B, 4 * Dp), jnp.float32)      # gates0
                + _nbytes((Dp, 4 * Dp), jnp.bfloat16)  # W_sum
                + _nbytes((1, 4 * Dp), jnp.float32)    # b
                + _nbytes((Dp, M), jnp.bfloat16)       # W_fc
                + _nbytes((1, M), jnp.float32)         # b_fc
                + _nbytes((T, B, M), jnp.float32)      # out block
                + _nbytes((T, B, Dp), jnp.bfloat16))   # hs scratch
    vmem_limit = int(min(64 << 20, max(4 * resident + (2 << 20), 16 << 20)))

    out_tbm = pl.pallas_call(
        decoder_kernel,
        out_shape=jax.ShapeDtypeStruct((T, B, M), jnp.float32),
        scratch_shapes=[pltpu.VMEM((T, B, Dp), jnp.bfloat16)],
        compiler_params=pltpu.CompilerParams(vmem_limit_bytes=vmem_limit),
        # No grid: every operand is a single VMEM-resident block; the whole
        # recurrence is one invocation.
    )(gates0_p, params["w_sum_p"], params["b_p"],
      params["w_fc_p"], params["b_fc"])

    # (T, B, M) -> (B, M, T)  == torch .transpose(1, 2) applied to (B, T, M)
    return jnp.transpose(out_tbm, (1, 2, 0))


# ------------------------------- references ----------------------------------

def decoder_reference_f32(encoding, target_length, params):
    """Pure-f32 JAX reference mirroring the PyTorch module exactly."""
    B, D = encoding.shape
    w_ih_t, w_hh_t = params["w_ih_t_f32"], params["w_hh_t_f32"]
    b = params["b_f32"]

    def cell(x, h, c):
        gates = x @ w_ih_t + h @ w_hh_t + b
        i_g = jax.nn.sigmoid(gates[:, 0 * D:1 * D])
        f_g = jax.nn.sigmoid(gates[:, 1 * D:2 * D])
        g_g = jnp.tanh(gates[:, 2 * D:3 * D])
        o_g = jax.nn.sigmoid(gates[:, 3 * D:4 * D])
        c_new = f_g * c + i_g * g_g
        h_new = o_g * jnp.tanh(c_new)
        return h_new, c_new

    x = jnp.zeros_like(encoding)
    h = encoding
    c = jnp.zeros_like(encoding)
    hs = []
    for _ in range(int(target_length)):
        h, c = cell(x, h, c)
        x = h
        hs.append(h)
    hs = jnp.stack(hs, axis=1)                               # (B, T, D)
    y = jax.nn.sigmoid(hs @ params["w_fc_t_f32"] + params["b_fc"])
    return jnp.transpose(y, (0, 2, 1))                       # (B, M, T)


def decoder_reference_matched(encoding, target_length, params):
    """Reference with the kernel's precision policy (f32 step-0 gates, bf16
    matmul operands, f32 accumulation / elementwise, bf16 h fed to FC)."""
    B, D = encoding.shape
    wsum = params["w_sum_t_bf16"]
    wfc = params["w_fc_t_bf16"]
    b, bfc = params["b_f32"], params["b_fc"]

    def lstm_update(gates, c):
        i_g = jax.nn.sigmoid(gates[:, 0 * D:1 * D])
        f_g = jax.nn.sigmoid(gates[:, 1 * D:2 * D])
        g_g = jnp.tanh(gates[:, 2 * D:3 * D])
        o_g = jax.nn.sigmoid(gates[:, 3 * D:4 * D])
        c_new = f_g * c + i_g * g_g
        return o_g * jnp.tanh(c_new), c_new

    def fc(h_bf):
        return jax.nn.sigmoid(
            jnp.dot(h_bf, wfc, preferred_element_type=jnp.float32) + bfc)

    gates = encoding.astype(jnp.float32) @ params["w_hh_t_f32"] + b
    h, c = lstm_update(gates, jnp.zeros((B, D), jnp.float32))
    h_bf = h.astype(jnp.bfloat16)
    ys = [fc(h_bf)]
    for _ in range(1, int(target_length)):
        gates = jnp.dot(h_bf, wsum, preferred_element_type=jnp.float32) + b
        h, c = lstm_update(gates, c)
        h_bf = h.astype(jnp.bfloat16)
        ys.append(fc(h_bf))
    y = jnp.stack(ys, axis=0)                                # (T, B, M)
    return jnp.transpose(y, (1, 2, 0))                       # (B, M, T)


# --------------------------------- params ------------------------------------

def init_params(key, encoding_dims, num_mels):
    """Deterministic init matching PyTorch param shapes (uniform +/- 1/sqrt(H))."""
    D, M = encoding_dims, num_mels
    Dp = _round_up(D, 128)
    k = jax.random.split(key, 6)
    s = 1.0 / jnp.sqrt(D)
    w_ih = jax.random.uniform(k[0], (4 * D, D), jnp.float32, -s, s)
    w_hh = jax.random.uniform(k[1], (4 * D, D), jnp.float32, -s, s)
    b_ih = jax.random.uniform(k[2], (4 * D,), jnp.float32, -s, s)
    b_hh = jax.random.uniform(k[3], (4 * D,), jnp.float32, -s, s)
    w_fc = jax.random.uniform(k[4], (M, D), jnp.float32, -s, s)
    b_fc = jax.random.uniform(k[5], (M,), jnp.float32, -s, s)

    w_sum_t = (w_ih + w_hh).T                                # (D, 4D) f32
    b = (b_ih + b_hh).reshape(1, 4 * D)                      # (1, 4D) f32

    return {
        # --- padded, lane-aligned kernel operands (bf16 MXU, f32 bias) ---
        "w_sum_p": _pad_gate_cols(_pad_rows(w_sum_t, D, Dp), D, Dp
                                  ).astype(jnp.bfloat16),    # (Dp, 4Dp)
        "b_p": _pad_gate_cols(b, D, Dp),                     # (1, 4Dp) f32
        "w_fc_p": _pad_rows(w_fc.T, D, Dp).astype(jnp.bfloat16),  # (Dp, M)
        "b_fc": b_fc.reshape(1, M),                          # (1, M)  f32
        # --- unpadded copies for the wrapper prologue and references ---
        "w_ih_t_f32": w_ih.T,
        "w_hh_t_f32": w_hh.T,
        "w_fc_t_f32": w_fc.T,
        "b_f32": b,
        "w_sum_t_bf16": w_sum_t.astype(jnp.bfloat16),
        "w_fc_t_bf16": w_fc.T.astype(jnp.bfloat16),
    }


# ---------------------------------- main --------------------------------------

if __name__ == "__main__":
    # Small hp-consistent shapes: encoding_dims=32, num_mels=16
    B, D, M, T = 2, 32, 16, 8

    key = jax.random.PRNGKey(0)
    kp, ke = jax.random.split(key)
    params = init_params(kp, D, M)
    encoding = jax.random.normal(ke, (B, D), jnp.float32)

    out = jax.block_until_ready(decoder_forward(encoding, T, params))
    assert out.shape == (B, M, T), out.shape

    # Tight check against a reference with the same precision policy.
    ref_m = jax.block_until_ready(decoder_reference_matched(encoding, T, params))
    assert jnp.allclose(out, ref_m, atol=1e-4, rtol=1e-4), \
        float(jnp.max(jnp.abs(out - ref_m)))

    # Loose check against the exact f32 PyTorch-equivalent reference
    # (difference is only bf16 rounding of the MXU operands / pre-summed W).
    ref_f = jax.block_until_ready(decoder_reference_f32(encoding, T, params))
    assert jnp.allclose(out, ref_f, atol=5e-2, rtol=0.0), \
        float(jnp.max(jnp.abs(out - ref_f)))

    print("KERNEL_OK")
</pallas_src>

<mosaic_0001>
module attributes {stable_mosaic.version = 11 : i64} {
  func.func @decoder_kernel(%arg0: memref<2x512xf32, #tpu.memory_space<vmem>>, %arg1: memref<128x512xbf16, #tpu.memory_space<vmem>>, %arg2: memref<1x512xf32, #tpu.memory_space<vmem>>, %arg3: memref<128x16xbf16, #tpu.memory_space<vmem>>, %arg4: memref<1x16xf32, #tpu.memory_space<vmem>>, %arg5: memref<8x2x16xf32, #tpu.memory_space<vmem>>, %arg6: memref<8x2x128xbf16, #tpu.memory_space<vmem>>) attributes {dimension_semantics = [], scalar_prefetch = 0 : i64, scratch_operands = 1 : i64, tpu.core_type = #tpu.core_type<tc>} {
    %c0 = arith.constant 0 : index
    %c0_0 = arith.constant 0 : index
    %0 = vector.load %arg1[%c0, %c0_0] : memref<128x512xbf16, #tpu.memory_space<vmem>>, vector<128x512xbf16>
    %c0_1 = arith.constant 0 : index
    %c0_2 = arith.constant 0 : index
    %1 = vector.load %arg2[%c0_1, %c0_2] : memref<1x512xf32, #tpu.memory_space<vmem>>, vector<1x512xf32>
    %2 = vector.shape_cast %1 : vector<1x512xf32> to vector<1x512xf32>
    %3 = vector.broadcast %2 : vector<1x512xf32> to vector<2x512xf32>
    %c0_3 = arith.constant 0 : index
    %c0_4 = arith.constant 0 : index
    %4 = vector.load %arg0[%c0_3, %c0_4] : memref<2x512xf32, #tpu.memory_space<vmem>>, vector<2x512xf32>
    %cst = arith.constant 0.000000e+00 : f32
    %5 = vector.broadcast %cst : f32 to vector<2x128xf32>
    %6 = vector.extract_strided_slice %4 {offsets = [0, 0], sizes = [2, 128], strides = [1, 1]} : vector<2x512xf32> to vector<2x128xf32>
    %7 = arith.negf %6 : vector<2x128xf32>
    %8 = math.exp %7 : vector<2x128xf32>
    %cst_5 = arith.constant 1.000000e+00 : f32
    %9 = vector.broadcast %cst_5 : f32 to vector<2x128xf32>
    %10 = arith.addf %9, %8 : vector<2x128xf32>
    %11 = arith.divf %9, %10 : vector<2x128xf32>
    %12 = vector.extract_strided_slice %4 {offsets = [0, 128], sizes = [2, 128], strides = [1, 1]} : vector<2x512xf32> to vector<2x128xf32>
    %13 = arith.negf %12 : vector<2x128xf32>
    %14 = math.exp %13 : vector<2x128xf32>
    %cst_6 = arith.constant 1.000000e+00 : f32
    %15 = vector.broadcast %cst_6 : f32 to vector<2x128xf32>
    %16 = arith.addf %15, %14 : vector<2x128xf32>
    %17 = arith.divf %15, %16 : vector<2x128xf32>
    %18 = vector.extract_strided_slice %4 {offsets = [0, 256], sizes = [2, 128], strides = [1, 1]} : vector<2x512xf32> to vector<2x128xf32>
    %19 = math.tanh %18 : vector<2x128xf32>
    %20 = vector.extract_strided_slice %4 {offsets = [0, 384], sizes = [2, 128], strides = [1, 1]} : vector<2x512xf32> to vector<2x128xf32>
    %21 = arith.negf %20 : vector<2x128xf32>
    %22 = math.exp %21 : vector<2x128xf32>
    %cst_7 = arith.constant 1.000000e+00 : f32
    %23 = vector.broadcast %cst_7 : f32 to vector<2x128xf32>
    %24 = arith.addf %23, %22 : vector<2x128xf32>
    %25 = arith.divf %23, %24 : vector<2x128xf32>
    %26 = arith.mulf %17, %5 : vector<2x128xf32>
    %27 = arith.mulf %11, %19 : vector<2x128xf32>
    %28 = arith.addf %26, %27 : vector<2x128xf32>
    %29 = math.tanh %28 : vector<2x128xf32>
    %30 = arith.mulf %25, %29 : vector<2x128xf32>
    %31 = arith.truncf %30 : vector<2x128xf32> to vector<2x128xbf16>
    %c0_8 = arith.constant 0 : index
    %c0_9 = arith.constant 0 : index
    %c0_10 = arith.constant 0 : index
    %32 = vector.load %arg6[%c0_8, %c0_9, %c0_10] : memref<8x2x128xbf16, #tpu.memory_space<vmem>>, vector<1x2x128xbf16>
    %33 = vector.shape_cast %32 : vector<1x2x128xbf16> to vector<2x128xbf16>
    %34 = vector.shape_cast %31 : vector<2x128xbf16> to vector<1x2x128xbf16>
    tpu.vector_store %arg6[%c0_8, %c0_9, %c0_10], %34 {strides = array<i32>} : memref<8x2x128xbf16, #tpu.memory_space<vmem>>, vector<1x2x128xbf16>,
    %c1_i32 = arith.constant 1 : i32
    %cst_11 = arith.constant dense<0.000000e+00> : vector<2x512xf32>
    %35 = tpu.matmul %31, %0, %cst_11 {dimension_numbers = #tpu.dot_dimension_numbers<[1], [0], [0], [1], [0, 0, 1, 1], [], []>} : vector<2x128xbf16>, vector<128x512xbf16>, vector<2x512xf32> -> vector<2x512xf32>
    %36 = arith.addf %35, %3 : vector<2x512xf32>
    %37 = vector.extract_strided_slice %36 {offsets = [0, 0], sizes = [2, 128], strides = [1, 1]} : vector<2x512xf32> to vector<2x128xf32>
    %38 = arith.negf %37 : vector<2x128xf32>
    %39 = math.exp %38 : vector<2x128xf32>
    %cst_12 = arith.constant 1.000000e+00 : f32
    %40 = vector.broadcast %cst_12 : f32 to vector<2x128xf32>
    %41 = arith.addf %40, %39 : vector<2x128xf32>
    %42 = arith.divf %40, %41 : vector<2x128xf32>
    %43 = vector.extract_strided_slice %36 {offsets = [0, 128], sizes = [2, 128], strides = [1, 1]} : vector<2x512xf32> to vector<2x128xf32>
    %44 = arith.negf %43 : vector<2x128xf32>
    %45 = math.exp %44 : vector<2x128xf32>
    %cst_13 = arith.constant 1.000000e+00 : f32
    %46 = vector.broadcast %cst_13 : f32 to vector<2x128xf32>
    %47 = arith.addf %46, %45 : vector<2x128xf32>
    %48 = arith.divf %46, %47 : vector<2x128xf32>
    %49 = vector.extract_strided_slice %36 {offsets = [0, 256], sizes = [2, 128], strides = [1, 1]} : vector<2x512xf32> to vector<2x128xf32>
    %50 = math.tanh %49 : vector<2x128xf32>
    %51 = vector.extract_strided_slice %36 {offsets = [0, 384], sizes = [2, 128], strides = [1, 1]} : vector<2x512xf32> to vector<2x128xf32>
    %52 = arith.negf %51 : vector<2x128xf32>
    %53 = math.exp %52 : vector<2x128xf32>
    %cst_14 = arith.constant 1.000000e+00 : f32
    %54 = vector.broadcast %cst_14 : f32 to vector<2x128xf32>
    %55 = arith.addf %54, %53 : vector<2x128xf32>
    %56 = arith.divf %54, %55 : vector<2x128xf32>
    %57 = arith.mulf %48, %28 : vector<2x128xf32>
    %58 = arith.mulf %42, %50 : vector<2x128xf32>
    %59 = arith.addf %57, %58 : vector<2x128xf32>
    %60 = math.tanh %59 : vector<2x128xf32>
    %61 = arith.mulf %56, %60 : vector<2x128xf32>
    %62 = arith.truncf %61 : vector<2x128xf32> to vector<2x128xbf16>
    %63 = arith.index_cast %c1_i32 : i32 to index
    %c0_15 = arith.constant 0 : index
    %c0_16 = arith.constant 0 : index
    %64 = vector.load %arg6[%63, %c0_15, %c0_16] : memref<8x2x128xbf16, #tpu.memory_space<vmem>>, vector<1x2x128xbf16>
    %65 = vector.shape_cast %64 : vector<1x2x128xbf16> to vector<2x128xbf16>
    %66 = vector.shape_cast %62 : vector<2x128xbf16> to vector<1x2x128xbf16>
    tpu.vector_store %arg6[%63, %c0_15, %c0_16], %66 {strides = array<i32>} : memref<8x2x128xbf16, #tpu.memory_space<vmem>>, vector<1x2x128xbf16>,
    %c2_i32 = arith.constant 2 : i32
    %cst_17 = arith.constant dense<0.000000e+00> : vector<2x512xf32>
    %67 = tpu.matmul %62, %0, %cst_17 {dimension_numbers = #tpu.dot_dimension_numbers<[1], [0], [0], [1], [0, 0, 1, 1], [], []>} : vector<2x128xbf16>, vector<128x512xbf16>, vector<2x512xf32> -> vector<2x512xf32>
    %68 = arith.addf %67, %3 : vector<2x512xf32>
    %69 = vector.extract_strided_slice %68 {offsets = [0, 0], sizes = [2, 128], strides = [1, 1]} : vector<2x512xf32> to vector<2x128xf32>
    %70 = arith.negf %69 : vector<2x128xf32>
    %71 = math.exp %70 : vector<2x128xf32>
    %cst_18 = arith.constant 1.000000e+00 : f32
    %72 = vector.broadcast %cst_18 : f32 to vector<2x128xf32>
    %73 = arith.addf %72, %71 : vector<2x128xf32>
    %74 = arith.divf %72, %73 : vector<2x128xf32>
    %75 = vector.extract_strided_slice %68 {offsets = [0, 128], sizes = [2, 128], strides = [1, 1]} : vector<2x512xf32> to vector<2x128xf32>
    %76 = arith.negf %75 : vector<2x128xf32>
    %77 = math.exp %76 : vector<2x128xf32>
    %cst_19 = arith.constant 1.000000e+00 : f32
    %78 = vector.broadcast %cst_19 : f32 to vector<2x128xf32>
    %79 = arith.addf %78, %77 : vector<2x128xf32>
    %80 = arith.divf %78, %79 : vector<2x128xf32>
    %81 = vector.extract_strided_slice %68 {offsets = [0, 256], sizes = [2, 128], strides = [1, 1]} : vector<2x512xf32> to vector<2x128xf32>
    %82 = math.tanh %81 : vector<2x128xf32>
    %83 = vector.extract_strided_slice %68 {offsets = [0, 384], sizes = [2, 128], strides = [1, 1]} : vector<2x512xf32> to vector<2x128xf32>
    %84 = arith.negf %83 : vector<2x128xf32>
    %85 = math.exp %84 : vector<2x128xf32>
    %cst_20 = arith.constant 1.000000e+00 : f32
    %86 = vector.broadcast %cst_20 : f32 to vector<2x128xf32>
    %87 = arith.addf %86, %85 : vector<2x128xf32>
    %88 = arith.divf %86, %87 : vector<2x128xf32>
    %89 = arith.mulf %80, %59 : vector<2x128xf32>
    %90 = arith.mulf %74, %82 : vector<2x128xf32>
    %91 = arith.addf %89, %90 : vector<2x128xf32>
    %92 = math.tanh %91 : vector<2x128xf32>
    %93 = arith.mulf %88, %92 : vector<2x128xf32>
    %94 = arith.truncf %93 : vector<2x128xf32> to vector<2x128xbf16>
    %95 = arith.index_cast %c2_i32 : i32 to index
    %c0_21 = arith.constant 0 : index
    %c0_22 = arith.constant 0 : index
    %96 = vector.load %arg6[%95, %c0_21, %c0_22] : memref<8x2x128xbf16, #tpu.memory_space<vmem>>, vector<1x2x128xbf16>
    %97 = vector.shape_cast %96 : vector<1x2x128xbf16> to vector<2x128xbf16>
    %98 = vector.shape_cast %94 : vector<2x128xbf16> to vector<1x2x128xbf16>
    tpu.vector_store %arg6[%95, %c0_21, %c0_22], %98 {strides = array<i32>} : memref<8x2x128xbf16, #tpu.memory_space<vmem>>, vector<1x2x128xbf16>,
    %c3_i32 = arith.constant 3 : i32
    %cst_23 = arith.constant dense<0.000000e+00> : vector<2x512xf32>
    %99 = tpu.matmul %94, %0, %cst_23 {dimension_numbers = #tpu.dot_dimension_numbers<[1], [0], [0], [1], [0, 0, 1, 1], [], []>} : vector<2x128xbf16>, vector<128x512xbf16>, vector<2x512xf32> -> vector<2x512xf32>
    %100 = arith.addf %99, %3 : vector<2x512xf32>
    %101 = vector.extract_strided_slice %100 {offsets = [0, 0], sizes = [2, 128], strides = [1, 1]} : vector<2x512xf32> to vector<2x128xf32>
    %102 = arith.negf %101 : vector<2x128xf32>
    %103 = math.exp %102 : vector<2x128xf32>
    %cst_24 = arith.constant 1.000000e+00 : f32
    %104 = vector.broadcast %cst_24 : f32 to vector<2x128xf32>
    %105 = arith.addf %104, %103 : vector<2x128xf32>
    %106 = arith.divf %104, %105 : vector<2x128xf32>
    %107 = vector.extract_strided_slice %100 {offsets = [0, 128], sizes = [2, 128], strides = [1, 1]} : vector<2x512xf32> to vector<2x128xf32>
    %108 = arith.negf %107 : vector<2x128xf32>
    %109 = math.exp %108 : vector<2x128xf32>
    %cst_25 = arith.constant 1.000000e+00 : f32
    %110 = vector.broadcast %cst_25 : f32 to vector<2x128xf32>
    %111 = arith.addf %110, %109 : vector<2x128xf32>
    %112 = arith.divf %110, %111 : vector<2x128xf32>
    %113 = vector.extract_strided_slice %100 {offsets = [0, 256], sizes = [2, 128], strides = [1, 1]} : vector<2x512xf32> to vector<2x128xf32>
    %114 = math.tanh %113 : vector<2x128xf32>
    %115 = vector.extract_strided_slice %100 {offsets = [0, 384], sizes = [2, 128], strides = [1, 1]} : vector<2x512xf32> to vector<2x128xf32>
    %116 = arith.negf %115 : vector<2x128xf32>
    %117 = math.exp %116 : vector<2x128xf32>
    %cst_26 = arith.constant 1.000000e+00 : f32
    %118 = vector.broadcast %cst_26 : f32 to vector<2x128xf32>
    %119 = arith.addf %118, %117 : vector<2x128xf32>
    %120 = arith.divf %118, %119 : vector<2x128xf32>
    %121 = arith.mulf %112, %91 : vector<2x128xf32>
    %122 = arith.mulf %106, %114 : vector<2x128xf32>
    %123 = arith.addf %121, %122 : vector<2x128xf32>
    %124 = math.tanh %123 : vector<2x128xf32>
    %125 = arith.mulf %120, %124 : vector<2x128xf32>
    %126 = arith.truncf %125 : vector<2x128xf32> to vector<2x128xbf16>
    %127 = arith.index_cast %c3_i32 : i32 to index
    %c0_27 = arith.constant 0 : index
    %c0_28 = arith.constant 0 : index
    %128 = vector.load %arg6[%127, %c0_27, %c0_28] : memref<8x2x128xbf16, #tpu.memory_space<vmem>>, vector<1x2x128xbf16>
    %129 = vector.shape_cast %128 : vector<1x2x128xbf16> to vector<2x128xbf16>
    %130 = vector.shape_cast %126 : vector<2x128xbf16> to vector<1x2x128xbf16>
    tpu.vector_store %arg6[%127, %c0_27, %c0_28], %130 {strides = array<i32>} : memref<8x2x128xbf16, #tpu.memory_space<vmem>>, vector<1x2x128xbf16>,
    %c4_i32 = arith.constant 4 : i32
    %cst_29 = arith.constant dense<0.000000e+00> : vector<2x512xf32>
    %131 = tpu.matmul %126, %0, %cst_29 {dimension_numbers = #tpu.dot_dimension_numbers<[1], [0], [0], [1], [0, 0, 1, 1], [], []>} : vector<2x128xbf16>, vector<128x512xbf16>, vector<2x512xf32> -> vector<2x512xf32>
    %132 = arith.addf %131, %3 : vector<2x512xf32>
    %133 = vector.extract_strided_slice %132 {offsets = [0, 0], sizes = [2, 128], strides = [1, 1]} : vector<2x512xf32> to vector<2x128xf32>
    %134 = arith.negf %133 : vector<2x128xf32>
    %135 = math.exp %134 : vector<2x128xf32>
    %cst_30 = arith.constant 1.000000e+00 : f32
    %136 = vector.broadcast %cst_30 : f32 to vector<2x128xf32>
    %137 = arith.addf %136, %135 : vector<2x128xf32>
    %138 = arith.divf %136, %137 : vector<2x128xf32>
    %139 = vector.extract_strided_slice %132 {offsets = [0, 128], sizes = [2, 128], strides = [1, 1]} : vector<2x512xf32> to vector<2x128xf32>
    %140 = arith.negf %139 : vector<2x128xf32>
    %141 = math.exp %140 : vector<2x128xf32>
    %cst_31 = arith.constant 1.000000e+00 : f32
    %142 = vector.broadcast %cst_31 : f32 to vector<2x128xf32>
    %143 = arith.addf %142, %141 : vector<2x128xf32>
    %144 = arith.divf %142, %143 : vector<2x128xf32>
    %145 = vector.extract_strided_slice %132 {offsets = [0, 256], sizes = [2, 128], strides = [1, 1]} : vector<2x512xf32> to vector<2x128xf32>
    %146 = math.tanh %145 : vector<2x128xf32>
    %147 = vector.extract_strided_slice %132 {offsets = [0, 384], sizes = [2, 128], strides = [1, 1]} : vector<2x512xf32> to vector<2x128xf32>
    %148 = arith.negf %147 : vector<2x128xf32>
    %149 = math.exp %148 : vector<2x128xf32>
    %cst_32 = arith.constant 1.000000e+00 : f32
    %150 = vector.broadcast %cst_32 : f32 to vector<2x128xf32>
    %151 = arith.addf %150, %149 : vector<2x128xf32>
    %152 = arith.divf %150, %151 : vector<2x128xf32>
    %153 = arith.mulf %144, %123 : vector<2x128xf32>
    %154 = arith.mulf %138, %146 : vector<2x128xf32>
    %155 = arith.addf %153, %154 : vector<2x128xf32>
    %156 = math.tanh %155 : vector<2x128xf32>
    %157 = arith.mulf %152, %156 : vector<2x128xf32>
    %158 = arith.truncf %157 : vector<2x128xf32> to vector<2x128xbf16>
    %159 = arith.index_cast %c4_i32 : i32 to index
    %c0_33 = arith.constant 0 : index
    %c0_34 = arith.constant 0 : index
    %160 = vector.load %arg6[%159, %c0_33, %c0_34] : memref<8x2x128xbf16, #tpu.memory_space<vmem>>, vector<1x2x128xbf16>
    %161 = vector.shape_cast %160 : vector<1x2x128xbf16> to vector<2x128xbf16>
    %162 = vector.shape_cast %158 : vector<2x128xbf16> to vector<1x2x128xbf16>
    tpu.vector_store %arg6[%159, %c0_33, %c0_34], %162 {strides = array<i32>} : memref<8x2x128xbf16, #tpu.memory_space<vmem>>, vector<1x2x128xbf16>,
    %c5_i32 = arith.constant 5 : i32
    %cst_35 = arith.constant dense<0.000000e+00> : vector<2x512xf32>
    %163 = tpu.matmul %158, %0, %cst_35 {dimension_numbers = #tpu.dot_dimension_numbers<[1], [0], [0], [1], [0, 0, 1, 1], [], []>} : vector<2x128xbf16>, vector<128x512xbf16>, vector<2x512xf32> -> vector<2x512xf32>
    %164 = arith.addf %163, %3 : vector<2x512xf32>
    %165 = vector.extract_strided_slice %164 {offsets = [0, 0], sizes = [2, 128], strides = [1, 1]} : vector<2x512xf32> to vector<2x128xf32>
    %166 = arith.negf %165 : vector<2x128xf32>
    %167 = math.exp %166 : vector<2x128xf32>
    %cst_36 = arith.constant 1.000000e+00 : f32
    %168 = vector.broadcast %cst_36 : f32 to vector<2x128xf32>
    %169 = arith.addf %168, %167 : vector<2x128xf32>
    %170 = arith.divf %168, %169 : vector<2x128xf32>
    %171 = vector.extract_strided_slice %164 {offsets = [0, 128], sizes = [2, 128], strides = [1, 1]} : vector<2x512xf32> to vector<2x128xf32>
    %172 = arith.negf %171 : vector<2x128xf32>
    %173 = math.exp %172 : vector<2x128xf32>
    %cst_37 = arith.constant 1.000000e+00 : f32
    %174 = vector.broadcast %cst_37 : f32 to vector<2x128xf32>
    %175 = arith.addf %174, %173 : vector<2x128xf32>
    %176 = arith.divf %174, %175 : vector<2x128xf32>
    %177 = vector.extract_strided_slice %164 {offsets = [0, 256], sizes = [2, 128], strides = [1, 1]} : vector<2x512xf32> to vector<2x128xf32>
    %178 = math.tanh %177 : vector<2x128xf32>
    %179 = vector.extract_strided_slice %164 {offsets = [0, 384], sizes = [2, 128], strides = [1, 1]} : vector<2x512xf32> to vector<2x128xf32>
    %180 = arith.negf %179 : vector<2x128xf32>
    %181 = math.exp %180 : vector<2x128xf32>
    %cst_38 = arith.constant 1.000000e+00 : f32
    %182 = vector.broadcast %cst_38 : f32 to vector<2x128xf32>
    %183 = arith.addf %182, %181 : vector<2x128xf32>
    %184 = arith.divf %182, %183 : vector<2x128xf32>
    %185 = arith.mulf %176, %155 : vector<2x128xf32>
    %186 = arith.mulf %170, %178 : vector<2x128xf32>
    %187 = arith.addf %185, %186 : vector<2x128xf32>
    %188 = math.tanh %187 : vector<2x128xf32>
    %189 = arith.mulf %184, %188 : vector<2x128xf32>
    %190 = arith.truncf %189 : vector<2x128xf32> to vector<2x128xbf16>
    %191 = arith.index_cast %c5_i32 : i32 to index
    %c0_39 = arith.constant 0 : index
    %c0_40 = arith.constant 0 : index
    %192 = vector.load %arg6[%191, %c0_39, %c0_40] : memref<8x2x128xbf16, #tpu.memory_space<vmem>>, vector<1x2x128xbf16>
    %193 = vector.shape_cast %192 : vector<1x2x128xbf16> to vector<2x128xbf16>
    %194 = vector.shape_cast %190 : vector<2x128xbf16> to vector<1x2x128xbf16>
    tpu.vector_store %arg6[%191, %c0_39, %c0_40], %194 {strides = array<i32>} : memref<8x2x128xbf16, #tpu.memory_space<vmem>>, vector<1x2x128xbf16>,
    %c6_i32 = arith.constant 6 : i32
    %cst_41 = arith.constant dense<0.000000e+00> : vector<2x512xf32>
    %195 = tpu.matmul %190, %0, %cst_41 {dimension_numbers = #tpu.dot_dimension_numbers<[1], [0], [0], [1], [0, 0, 1, 1], [], []>} : vector<2x128xbf16>, vector<128x512xbf16>, vector<2x512xf32> -> vector<2x512xf32>
    %196 = arith.addf %195, %3 : vector<2x512xf32>
    %197 = vector.extract_strided_slice %196 {offsets = [0, 0], sizes = [2, 128], strides = [1, 1]} : vector<2x512xf32> to vector<2x128xf32>
    %198 = arith.negf %197 : vector<2x128xf32>
    %199 = math.exp %198 : vector<2x128xf32>
    %cst_42 = arith.constant 1.000000e+00 : f32
    %200 = vector.broadcast %cst_42 : f32 to vector<2x128xf32>
    %201 = arith.addf %200, %199 : vector<2x128xf32>
    %202 = arith.divf %200, %201 : vector<2x128xf32>
    %203 = vector.extract_strided_slice %196 {offsets = [0, 128], sizes = [2, 128], strides = [1, 1]} : vector<2x512xf32> to vector<2x128xf32>
    %204 = arith.negf %203 : vector<2x128xf32>
    %205 = math.exp %204 : vector<2x128xf32>
    %cst_43 = arith.constant 1.000000e+00 : f32
    %206 = vector.broadcast %cst_43 : f32 to vector<2x128xf32>
    %207 = arith.addf %206, %205 : vector<2x128xf32>
    %208 = arith.divf %206, %207 : vector<2x128xf32>
    %209 = vector.extract_strided_slice %196 {offsets = [0, 256], sizes = [2, 128], strides = [1, 1]} : vector<2x512xf32> to vector<2x128xf32>
    %210 = math.tanh %209 : vector<2x128xf32>
    %211 = vector.extract_strided_slice %196 {offsets = [0, 384], sizes = [2, 128], strides = [1, 1]} : vector<2x512xf32> to vector<2x128xf32>
    %212 = arith.negf %211 : vector<2x128xf32>
    %213 = math.exp %212 : vector<2x128xf32>
    %cst_44 = arith.constant 1.000000e+00 : f32
    %214 = vector.broadcast %cst_44 : f32 to vector<2x128xf32>
    %215 = arith.addf %214, %213 : vector<2x128xf32>
    %216 = arith.divf %214, %215 : vector<2x128xf32>
    %217 = arith.mulf %208, %187 : vector<2x128xf32>
    %218 = arith.mulf %202, %210 : vector<2x128xf32>
    %219 = arith.addf %217, %218 : vector<2x128xf32>
    %220 = math.tanh %219 : vector<2x128xf32>
    %221 = arith.mulf %216, %220 : vector<2x128xf32>
    %222 = arith.truncf %221 : vector<2x128xf32> to vector<2x128xbf16>
    %223 = arith.index_cast %c6_i32 : i32 to index
    %c0_45 = arith.constant 0 : index
    %c0_46 = arith.constant 0 : index
    %224 = vector.load %arg6[%223, %c0_45, %c0_46] : memref<8x2x128xbf16, #tpu.memory_space<vmem>>, vector<1x2x128xbf16>
    %225 = vector.shape_cast %224 : vector<1x2x128xbf16> to vector<2x128xbf16>
    %226 = vector.shape_cast %222 : vector<2x128xbf16> to vector<1x2x128xbf16>
    tpu.vector_store %arg6[%223, %c0_45, %c0_46], %226 {strides = array<i32>} : memref<8x2x128xbf16, #tpu.memory_space<vmem>>, vector<1x2x128xbf16>,
    %c7_i32 = arith.constant 7 : i32
    %cst_47 = arith.constant dense<0.000000e+00> : vector<2x512xf32>
    %227 = tpu.matmul %222, %0, %cst_47 {dimension_numbers = #tpu.dot_dimension_numbers<[1], [0], [0], [1], [0, 0, 1, 1], [], []>} : vector<2x128xbf16>, vector<128x512xbf16>, vector<2x512xf32> -> vector<2x512xf32>
    %228 = arith.addf %227, %3 : vector<2x512xf32>
    %229 = vector.extract_strided_slice %228 {offsets = [0, 0], sizes = [2, 128], strides = [1, 1]} : vector<2x512xf32> to vector<2x128xf32>
    %230 = arith.negf %229 : vector<2x128xf32>
    %231 = math.exp %230 : vector<2x128xf32>
    %cst_48 = arith.constant 1.000000e+00 : f32
    %232 = vector.broadcast %cst_48 : f32 to vector<2x128xf32>
    %233 = arith.addf %232, %231 : vector<2x128xf32>
    %234 = arith.divf %232, %233 : vector<2x128xf32>
    %235 = vector.extract_strided_slice %228 {offsets = [0, 128], sizes = [2, 128], strides = [1, 1]} : vector<2x512xf32> to vector<2x128xf32>
    %236 = arith.negf %235 : vector<2x128xf32>
    %237 = math.exp %236 : vector<2x128xf32>
    %cst_49 = arith.constant 1.000000e+00 : f32
    %238 = vector.broadcast %cst_49 : f32 to vector<2x128xf32>
    %239 = arith.addf %238, %237 : vector<2x128xf32>
    %240 = arith.divf %238, %239 : vector<2x128xf32>
    %241 = vector.extract_strided_slice %228 {offsets = [0, 256], sizes = [2, 128], strides = [1, 1]} : vector<2x512xf32> to vector<2x128xf32>
    %242 = math.tanh %241 : vector<2x128xf32>
    %243 = vector.extract_strided_slice %228 {offsets = [0, 384], sizes = [2, 128], strides = [1, 1]} : vector<2x512xf32> to vector<2x128xf32>
    %244 = arith.negf %243 : vector<2x128xf32>
    %245 = math.exp %244 : vector<2x128xf32>
    %cst_50 = arith.constant 1.000000e+00 : f32
    %246 = vector.broadcast %cst_50 : f32 to vector<2x128xf32>
    %247 = arith.addf %246, %245 : vector<2x128xf32>
    %248 = arith.divf %246, %247 : vector<2x128xf32>
    %249 = arith.mulf %240, %219 : vector<2x128xf32>
    %250 = arith.mulf %234, %242 : vector<2x128xf32>
    %251 = arith.addf %249, %250 : vector<2x128xf32>
    %252 = math.tanh %251 : vector<2x128xf32>
    %253 = arith.mulf %248, %252 : vector<2x128xf32>
    %254 = arith.truncf %253 : vector<2x128xf32> to vector<2x128xbf16>
    %255 = arith.index_cast %c7_i32 : i32 to index
    %c0_51 = arith.constant 0 : index
    %c0_52 = arith.constant 0 : index
    %256 = vector.load %arg6[%255, %c0_51, %c0_52] : memref<8x2x128xbf16, #tpu.memory_space<vmem>>, vector<1x2x128xbf16>
    %257 = vector.shape_cast %256 : vector<1x2x128xbf16> to vector<2x128xbf16>
    %258 = vector.shape_cast %254 : vector<2x128xbf16> to vector<1x2x128xbf16>
    tpu.vector_store %arg6[%255, %c0_51, %c0_52], %258 {strides = array<i32>} : memref<8x2x128xbf16, #tpu.memory_space<vmem>>, vector<1x2x128xbf16>,
    %c7_i32_53 = arith.constant 7 : i32
    %c0_54 = arith.constant 0 : index
    %c0_55 = arith.constant 0 : index
    %c0_56 = arith.constant 0 : index
    %259 = vector.load %arg6[%c0_54, %c0_55, %c0_56] : memref<8x2x128xbf16, #tpu.memory_space<vmem>>, vector<8x2x128xbf16>
    %c0_57 = arith.constant 0 : index
    %c0_58 = arith.constant 0 : index
    %260 = vector.load %arg3[%c0_57, %c0_58] : memref<128x16xbf16, #tpu.memory_space<vmem>>, vector<128x16xbf16>
    %261 = vector.shape_cast %260 : vector<128x16xbf16> to vector<1x128x16xbf16>
    %262 = vector.shape_cast %261 : vector<1x128x16xbf16> to vector<1x128x16xbf16>
    %263 = vector.broadcast %262 : vector<1x128x16xbf16> to vector<8x128x16xbf16>
    "tpu.trace_start"() <{level = 10 : i32, message = "tbd,tdm->tbm"}> : () -> ()
    %cst_59 = arith.constant dense<0.000000e+00> : vector<8x2x16xf32>
    %264 = tpu.matmul %259, %263, %cst_59 {dimension_numbers = #tpu.dot_dimension_numbers<[2], [1], [1], [2], [0, 0, 0, 1, 1, 2], [0], [0]>} : vector<8x2x128xbf16>, vector<8x128x16xbf16>, vector<8x2x16xf32> -> vector<8x2x16xf32>
    "tpu.trace_stop"() : () -> ()
    %c0_60 = arith.constant 0 : index
    %c0_61 = arith.constant 0 : index
    %265 = vector.load %arg4[%c0_60, %c0_61] : memref<1x16xf32, #tpu.memory_space<vmem>>, vector<1x16xf32>
    %266 = vector.shape_cast %265 : vector<1x16xf32> to vector<1x1x16xf32>
    %267 = vector.broadcast %266 : vector<1x1x16xf32> to vector<8x2x16xf32>
    %268 = arith.addf %264, %267 : vector<8x2x16xf32>
    %269 = arith.negf %268 : vector<8x2x16xf32>
    %270 = math.exp %269 : vector<8x2x16xf32>
    %cst_62 = arith.constant 1.000000e+00 : f32
    %271 = vector.broadcast %cst_62 : f32 to vector<8x2x16xf32>
    %272 = arith.addf %271, %270 : vector<8x2x16xf32>
    %273 = arith.divf %271, %272 : vector<8x2x16xf32>
    %c0_63 = arith.constant 0 : index
    %c0_64 = arith.constant 0 : index
    %c0_65 = arith.constant 0 : index
    %274 = vector.load %arg5[%c0_63, %c0_64, %c0_65] : memref<8x2x16xf32, #tpu.memory_space<vmem>>, vector<8x2x16xf32>
    tpu.vector_store %arg5[%c0_63, %c0_64, %c0_65], %273 {strides = array<i32>} : memref<8x2x16xf32, #tpu.memory_space<vmem>>, vector<8x2x16xf32>,
    return
  }
}

</mosaic_0001>

<bundles_post_ra>
// kernel: tpu_custom_call.1
= control target key start
LH: loop header
LB: loop body
LE: loop exit
PB: predicated region body
PF: predicated region fallthrough
CT: control target
= control target key end

     0   :  { %10 = vsyncpa [#allocation4], 0  ;;  %s2716_s0 = inlined_call_operand.vmem [shape: f32[2,512], index: 0, kind: input, shape index: {}]   ;;  %s2717_s1 = inlined_call_operand.hbm [shape: bf16[128,512], index: 1, kind: input, shape index: {}]   ;;  %s2718_s2 = inlined_call_operand.vmem [shape: f32[1,512], index: 2, kind: input, shape index: {}]   ;;  %s2719_s3 = inlined_call_operand.vmem [shape: bf16[128,16], index: 3, kind: input, shape index: {}]   ;;  %s2720_s4 = inlined_call_operand.vmem [shape: f32[1,16], index: 4, kind: input, shape index: {}]   ;;  %s2721_s5 = inlined_call_operand.hbm [shape: f32[8,2,16], index: 5, kind: output, shape index: {}]  }
   0x1   :  { %11 = vsyncpa [#allocation5], 0  ;;  %s2105_s18 = smov [#allocation3]  }
   0x2   :  { %s19_s19 = sshll.u32 %s2105_s18, 4  ;;  %s20_s19 = int_to_ptr.vmem [resolvable:$true] %s19_s19 }
   0x3   :  { %s2069_s20 = scalar_lea.vmem %s20_s19, 4096  ;;  %p2074_p1 = scmp.lt.s32.totalorder %s20_s19, %s20_s19 }
   0x4   :  { %p2070_p0 = scmp.ne.s32.totalorder %s20_s19, %s2069_s20  ;;  %p2075_p2 = scmp.lt.s32.totalorder %s2069_s20, %s2069_s20 }
   0x6   :  { %p2076_p3 = por %p2075_p2, %p2074_p1 }
   0x8   :  { %p2077_p4 = pnand %p2076_p3, %p2070_p0 }
   0xa   :  { %2080 = shalt.err (!%p2077_p4)
}
   0xb   :  { %s2106_s21 = smov 256   ;;  %s2107_s22 = smov 16  }
   0xc   :  { %25 = dma.hbm_to_vmem [thread:$0]  %s2717_s1, 4096, %s20_s19, [#allocation4], %s2106_s21, %s2106_s21, %s2107_s22  }
   0xd   :  { %2101 = dma.done.wait [#allocation4], 4096  }
   0xe   :  { %2102 = vsyncadd [#allocation4], 4294963200  ;;  %v2108_v0 = vmov 0   ;;  %v2149_v1 = vld [vmem:[#allocation3 + $0xe4] ss:$16 sps:$4 sm:$0xff]   ;;  %v90_v21 = vld [vmem:[%s2716_s0] sm:$0xff]  ;;  %v70_v56 = vlaneseq }
   0xf   :  { %316 = vmatprep.mubr.bf16.mxu0 %v2108_v0  ;;  %357 = vmatprep.mubr.bf16.mxu1 %v2108_v0  ;;  %v2151_v2 = vld [vmem:[#allocation3 + $0xe0] ss:$16 sps:$4 sm:$0xff]   ;;  %v2154_v3 = vld [vmem:[#allocation3 + $0xc4] ss:$16 sps:$4 sm:$0xff]   ;;  %v2162_v6 = vld [vmem:[#allocation3 + $0xec] ss:$16 sps:$4 sm:$0xff]  }
  0x10   :  { %284 = vmatprep.subr.bf16.mxu0 %v2149_v1  ;;  %v2157_v4 = vld [vmem:[#allocation3 + $0xc0] ss:$16 sps:$4 sm:$0xff]   ;;  %v2160_v5 = vld [vmem:[#allocation3 + $0xa4] ss:$16 sps:$4 sm:$0xff]   ;;  %v2164_v7 = vld [vmem:[#allocation3 + $0xe8] ss:$16 sps:$4 sm:$0xff]   ;;  %325 = vmatprep.subr.bf16.mxu1 %v2162_v6 }
  0x11   :  { %285 = vmatpush1.bf16.msra.mxu0 %v2151_v2  ;;  %v2167_v8 = vld [vmem:[#allocation3 + $0xa0] ss:$16 sps:$4 sm:$0xff]   ;;  %v2171_v9 = vld [vmem:[#allocation3 + $0x84] ss:$16 sps:$4 sm:$0xff]   ;;  %326 = vmatpush1.bf16.msra.mxu1 %v2164_v7  ;;  %v2174_v10 = vld [vmem:[#allocation3 + $0xcc] ss:$16 sps:$4 sm:$0xff]  }
  0x12   :  { %286 = vmatprep.subr.bf16.mxu0 %v2154_v3  ;;  %v2176_v11 = vld [vmem:[#allocation3 + $0xc8] ss:$16 sps:$4 sm:$0xff]   ;;  %327 = vmatprep.subr.bf16.mxu1 %v2174_v10  ;;  %v2180_v12 = vld [vmem:[#allocation3 + $0x80] ss:$16 sps:$4 sm:$0xff]   ;;  %v2182_v13 = vld [vmem:[#allocation3 + $0x64] ss:$16 sps:$4 sm:$0xff]  }
  0x13   :  { %v2184_v14 = vld [vmem:[#allocation3 + $0xac] ss:$16 sps:$4 sm:$0xff]   ;;  %v2188_v15 = vld [vmem:[#allocation3 + $0xa8] ss:$16 sps:$4 sm:$0xff]   ;;  %v2194_v17 = vld [vmem:[#allocation3 + $0x60] ss:$16 sps:$4 sm:$0xff]  }
  0x14   :  { %v2191_v16 = vld [vmem:[#allocation3 + $0x8c] ss:$16 sps:$4 sm:$0xff]   ;;  %v2197_v18 = vld [vmem:[#allocation3 + $0x44] ss:$16 sps:$4 sm:$0xff]   ;;  %v2200_v19 = vld [vmem:[#allocation3 + $0x88] ss:$16 sps:$4 sm:$0xff]  }
  0x15   :  { %287 = vmatpush1.bf16.msra.mxu0 %v2157_v4  ;;  %328 = vmatpush1.bf16.msra.mxu1 %v2176_v11  ;;  %v2203_v20 = vld [vmem:[#allocation3 + $0x6c] ss:$16 sps:$4 sm:$0xff]   ;;  %v1520_v22 = vmul.f32 -1.442695, %v90_v21  ;;  %v98_v23 = vrot.slane %v90_v21, 2  ;;  %v109_v31 = vrot.slane %v90_v21, 6 }
  0x16   :  { %288 = vmatprep.subr.bf16.mxu0 %v2160_v5  ;;  %329 = vmatprep.subr.bf16.mxu1 %v2184_v14  ;;  %v2209_v24 = vld [vmem:[#allocation3 + $0x40] ss:$16 sps:$4 sm:$0xff]   ;;  %v2211_v25 = vld [vmem:[#allocation3 + $0x24] ss:$16 sps:$4 sm:$0xff]   ;;  %v2215_v26 = vld [vmem:[#allocation3 + $0x68] ss:$16 sps:$4 sm:$0xff]  }
  0x17   :  { %1890 = vpow2.f32 %v1520_v22  ;;  %v1521_v27 = vmul.f32 -1.442695, %v98_v23  ;;  %v2217_v28 = vld [vmem:[#allocation3 + $0x20] ss:$16 sps:$4 sm:$0xff]   ;;  %v2220_v29 = vld [vmem:[#allocation3 + $0x4c] ss:$16 sps:$4 sm:$0xff]  }
  0x18   :  { %v2222_v30 = vld [vmem:[#allocation3 + $0x4] ss:$16 sps:$4 sm:$0xff]   ;;  %v2224_v32 = vld [vmem:[#allocation3 + $0x48] ss:$16 sps:$4 sm:$0xff]   ;;  %v2227_v33 = vld [vmem:[#allocation3 + $0x2c] ss:$16 sps:$4 sm:$0xff]  }
  0x19   :  { %289 = vmatpush1.bf16.msra.mxu0 %v2167_v8  ;;  %330 = vmatpush1.bf16.msra.mxu1 %v2188_v15  ;;  %1892 = vpow2.f32 %v1521_v27  ;;  %v2231_v34 = vld [vmem:[#allocation3] ss:$16 sps:$4 sm:$0xff]   ;;  %v2237_v35 = vld [vmem:[#allocation3 + $0x28] ss:$16 sps:$4 sm:$0xff]   ;;  %v106_v36 = vrot.slane %v90_v21, 4  ;;  %v71_v57 = vshrl.u32 %v70_v56, 7 }
  0x1a   :  { %290 = vmatprep.subr.bf16.mxu0 %v2171_v9  ;;  %331 = vmatprep.subr.bf16.mxu1 %v2191_v16  ;;  %v2240_v37 = vld [vmem:[#allocation3 + $0xc] ss:$16 sps:$4 sm:$0xff]   ;;  %v1522_v38 = vmul.f32 -1.442695, %v109_v31  ;;  %v2244_v39 = vld [vmem:[#allocation3 + $0x8] ss:$16 sps:$4 sm:$0xff]  }
  0x1b   :  { %1894 = vtanh.f32 %v106_v36  ;;  %v72_v58 = vsub.s32 0, %v71_v57  ;;  %v68_v59 = vld [vmem:[%s2718_s2] sm:$0xf]  ;;  %v76_v60 = vsub.s32 1, %v71_v57  ;;  %vm2110_vm0 = vmmov 0  }
  0x1c   :  { %1896 = vpow2.f32 %v1522_v38  ;;  %vm1494_vm1 = vcmask 123904  }
  0x1d   :  { %291 = vmatpush1.bf16.msra.mxu0 %v2180_v12  ;;  %332 = vmatpush1.bf16.msra.mxu1 %v2200_v19  ;;  %v2290_v61 = vrot.slane %v68_v59, %v72_v58  ;;  %v2292_v62 = vrot.slane %v68_v59, %v76_v60 }
  0x1e   :  { %292 = vmatprep.subr.bf16.mxu0 %v2182_v13  ;;  %333 = vmatprep.subr.bf16.mxu1 %v2203_v20 }
  0x21   :  { %293 = vmatpush1.bf16.msra.mxu0 %v2194_v17  ;;  %334 = vmatpush1.bf16.msra.mxu1 %v2215_v26 }
  0x22   :  { %294 = vmatprep.subr.bf16.mxu0 %v2197_v18  ;;  %335 = vmatprep.subr.bf16.mxu1 %v2220_v29 }
  0x24   :  { %v1891_v40 = vpop.eup %1890 }
  0x25   :  { %295 = vmatpush1.bf16.msra.mxu0 %v2209_v24  ;;  %336 = vmatpush1.bf16.msra.mxu1 %v2224_v32  ;;  %v94_v41 = vadd.f32 1.0, %v1891_v40  ;;  %v84_v40 = vsub.s32 3, %v71_v57 }
  0x26   :  { %296 = vmatprep.subr.bf16.mxu0 %v2211_v25  ;;  %337 = vmatprep.subr.bf16.mxu1 %v2227_v33  ;;  %v1893_v42 = vpop.eup %1892 }
  0x27   :  { %1898 = vrcp.f32 %v94_v41  ;;  %v103_v43 = vadd.f32 1.0, %v1893_v42 }
  0x28   :  { %v1895_v44 = vpop.eup %1894 }
  0x29   :  { %297 = vmatpush1.bf16.msra.mxu0 %v2217_v28  ;;  %338 = vmatpush1.bf16.msra.mxu1 %v2237_v35  ;;  %1900 = vrcp.f32 %v103_v43  ;;  %v1897_v45 = vpop.eup %1896 }
  0x2a   :  { %298 = vmatprep.subr.bf16.mxu0 %v2222_v30  ;;  %339 = vmatprep.subr.bf16.mxu1 %v2240_v37  ;;  %v114_v47 = vadd.f32 1.0, %v1897_v45  ;;  %v80_v45 = vsub.s32 2, %v71_v57 }
  0x2c   :  { %1902 = vrcp.f32 %v114_v47  ;;  %v2298_v47 = vrot.slane %v68_v59, %v80_v45 }
  0x2d   :  { %299 = vmatpush1.bf16.msra.mxu0 %v2231_v34  ;;  %340 = vmatpush1.bf16.msra.mxu1 %v2244_v39 }
  0x2e   :  { %393 = vmatprep.subr.bf16.mxu0 %v2149_v1  ;;  %434 = vmatprep.subr.bf16.mxu1 %v2162_v6 }
  0x34   :  { %v1899_v46 = vpop.eup %1898 }
  0x35   :  { %v118_v48 = vmul.f32 %v1899_v46, %v1895_v44  ;;  %v2296_v46 = vrot.slane %v68_v59, %v84_v40 }
  0x36   :  { %v1901_v49 = vpop.eup %1900 }
  0x37   :  { %v117_v50 = vmul.f32 0.0, %v1901_v49 }
  0x39   :  { %v2250_v51 = vadd.f32 %v118_v48, %v117_v50  ;;  %v1903_v52 = vpop.eup %1902 }
  0x3b   :  { %1904 = vtanh.f32 %v2250_v51 }
  0x48   :  { %v1905_v53 = vpop.eup %1904 }
  0x49   :  { %v121_v54 = vmul.f32 %v1905_v53, %v1903_v52 }
  0x4b   :  { %v122_v55 = vpack.c.bf16 %v121_v54, %v121_v54 }
  0x4d   :  { %123 = vst [vmem:[#allocation2] sm:$0x1] %v122_v55  ;;  %317 = vmatmul.mubr.bf16.vlgmr.msra.gmra.mxu0 %v122_v55  ;;  %358 = vmatmul.mubr.bf16.vlgmr.msra.gmra.mxu1 %v122_v55 }
  0x4e   :  { %394 = vmatpush1.bf16.msra.mxu0 %v2151_v2  ;;  %435 = vmatpush1.bf16.msra.mxu1 %v2164_v7 }
  0x4f   :  { %395 = vmatprep.subr.bf16.mxu0 %v2154_v3  ;;  %436 = vmatprep.subr.bf16.mxu1 %v2174_v10 }
  0x50   :  { %425 = vmatprep.mubr.bf16.mxu0 %v2108_v0  ;;  %466 = vmatprep.mubr.bf16.mxu1 %v2108_v0 }
  0x52   :  { %396 = vmatpush1.bf16.msra.mxu0 %v2157_v4  ;;  %437 = vmatpush1.bf16.msra.mxu1 %v2176_v11 }
  0x53   :  { %397 = vmatprep.subr.bf16.mxu0 %v2160_v5  ;;  %438 = vmatprep.subr.bf16.mxu1 %v2184_v14 }
  0x56   :  { %398 = vmatpush1.bf16.msra.mxu0 %v2167_v8  ;;  %439 = vmatpush1.bf16.msra.mxu1 %v2188_v15 }
  0x57   :  { %399 = vmatprep.subr.bf16.mxu0 %v2171_v9  ;;  %440 = vmatprep.subr.bf16.mxu1 %v2191_v16 }
  0x5a   :  { %400 = vmatpush1.bf16.msra.mxu0 %v2180_v12  ;;  %441 = vmatpush1.bf16.msra.mxu1 %v2200_v19 }
  0x5b   :  { %401 = vmatprep.subr.bf16.mxu0 %v2182_v13  ;;  %442 = vmatprep.subr.bf16.mxu1 %v2203_v20 }
  0x5e   :  { %402 = vmatpush1.bf16.msra.mxu0 %v2194_v17  ;;  %443 = vmatpush1.bf16.msra.mxu1 %v2215_v26 }
  0x5f   :  { %403 = vmatprep.subr.bf16.mxu0 %v2197_v18  ;;  %444 = vmatprep.subr.bf16.mxu1 %v2220_v29 }
  0x62   :  { %404 = vmatpush1.bf16.msra.mxu0 %v2209_v24  ;;  %445 = vmatpush1.bf16.msra.mxu1 %v2224_v32 }
  0x63   :  { %405 = vmatprep.subr.bf16.mxu0 %v2211_v25  ;;  %446 = vmatprep.subr.bf16.mxu1 %v2227_v33 }
  0x66   :  { %406 = vmatpush1.bf16.msra.mxu0 %v2217_v28  ;;  %447 = vmatpush1.bf16.msra.mxu1 %v2237_v35 }
  0x67   :  { %407 = vmatprep.subr.bf16.mxu0 %v2222_v30  ;;  %448 = vmatprep.subr.bf16.mxu1 %v2240_v37 }
  0x6a   :  { %408 = vmatpush1.bf16.msra.mxu0 %v2231_v34  ;;  %449 = vmatpush1.bf16.msra.mxu1 %v2244_v39 }
  0x6b   :  { %502 = vmatprep.subr.bf16.mxu0 %v2149_v1  ;;  %543 = vmatprep.subr.bf16.mxu1 %v2162_v6 }
 0x10d   :  { %v318_v63 = vpop.f32.mrf.mxu0  ;;  %v359_v21 = vpop.f32.mrf.mxu1 }
 0x10e   :  { %v319_v22 = vadd.f32 %v318_v63, %v2290_v61  ;;  %v360_v49 = vadd.f32 %v359_v21, %v2298_v47 }
 0x10f   :  { %v320_v23 = vpop.f32.mrf.mxu0  ;;  %v361_v27 = vpop.f32.mrf.mxu1 }
 0x110   :  { %v1555_v31 = vmul.f32 -1.442695, %v319_v22  ;;  %v321_v36 = vadd.f32 %v320_v23, %v2292_v62  ;;  %v362_v48 = vadd.f32 %v361_v27, %v2296_v46 }
 0x111   :  { %v322_v38 = vpop.f32.mrf.mxu0  ;;  %v363_v41 = vpop.f32.mrf.mxu1 }
 0x112   :  { %1906 = vpow2.f32 %v1555_v31  ;;  %v1556_v42 = vmul.f32 -1.442695, %v321_v36  ;;  %v1557_v50 = vmul.f32 -1.442695, %v362_v48 }
 0x113   :  { %v323_v43 = vpop.f32.mrf.mxu0  ;;  %v364_v44 = vpop.f32.mrf.mxu1 }
 0x114   :  { %1908 = vpow2.f32 %v1556_v42 }
 0x115   :  { %1910 = vtanh.f32 %v360_v49 }
 0x116   :  { %1912 = vpow2.f32 %v1557_v50 }
 0x11f   :  { %v1907_v52 = vpop.eup %1906 }
 0x120   :  { %v369_v53 = vadd.f32 1.0, %v1907_v52 }
 0x121   :  { %v1909_v54 = vpop.eup %1908 }
 0x122   :  { %1914 = vrcp.f32 %v369_v53  ;;  %v375_v55 = vadd.f32 1.0, %v1909_v54  ;;  %v1911_v56 = vpop.eup %1910 }
 0x123   :  { %v1913_v58 = vpop.eup %1912 }
 0x124   :  { %1916 = vrcp.f32 %v375_v55  ;;  %v382_v63 = vadd.f32 1.0, %v1913_v58 }
 0x126   :  { %1918 = vrcp.f32 %v382_v63 }
 0x12f   :  { %v1915_v57 = vpop.eup %1914 }
 0x130   :  { %v386_v22 = vmul.f32 %v1915_v57, %v1911_v56 }
 0x131   :  { %v1917_v60 = vpop.eup %1916 }
 0x132   :  { %v385_v59 = vmul.f32 %v1917_v60, %v2250_v51 }
 0x133   :  { %v1919_v21 = vpop.eup %1918 }
 0x134   :  { %v2303_v23 = vadd.f32 %v386_v22, %v385_v59 }
 0x136   :  { %1920 = vtanh.f32 %v2303_v23 }
 0x143   :  { %v1921_v27 = vpop.eup %1920 }
 0x144   :  { %v389_v31 = vmul.f32 %v1921_v27, %v1919_v21 }
 0x146   :  { %v390_v36 = vpack.c.bf16 %v389_v31, %v389_v31 }
 0x148   :  { %392 = vst [vmem:[#allocation2 + $0x1] sm:$0x1] %v390_v36  ;;  %426 = vmatmul.mubr.bf16.vlgmr.msra.gmra.mxu0 %v390_v36  ;;  %467 = vmatmul.mubr.bf16.vlgmr.msra.gmra.mxu1 %v390_v36 }
 0x149   :  { %503 = vmatpush1.bf16.msra.mxu0 %v2151_v2  ;;  %544 = vmatpush1.bf16.msra.mxu1 %v2164_v7 }
 0x14a   :  { %504 = vmatprep.subr.bf16.mxu0 %v2154_v3  ;;  %545 = vmatprep.subr.bf16.mxu1 %v2174_v10 }
 0x14b   :  { %534 = vmatprep.mubr.bf16.mxu0 %v2108_v0  ;;  %575 = vmatprep.mubr.bf16.mxu1 %v2108_v0 }
 0x14d   :  { %505 = vmatpush1.bf16.msra.mxu0 %v2157_v4  ;;  %546 = vmatpush1.bf16.msra.mxu1 %v2176_v11 }
 0x14e   :  { %506 = vmatprep.subr.bf16.mxu0 %v2160_v5  ;;  %547 = vmatprep.subr.bf16.mxu1 %v2184_v14 }
 0x151   :  { %507 = vmatpush1.bf16.msra.mxu0 %v2167_v8  ;;  %548 = vmatpush1.bf16.msra.mxu1 %v2188_v15 }
 0x152   :  { %508 = vmatprep.subr.bf16.mxu0 %v2171_v9  ;;  %549 = vmatprep.subr.bf16.mxu1 %v2191_v16 }
 0x155   :  { %509 = vmatpush1.bf16.msra.mxu0 %v2180_v12  ;;  %550 = vmatpush1.bf16.msra.mxu1 %v2200_v19 }
 0x156   :  { %510 = vmatprep.subr.bf16.mxu0 %v2182_v13  ;;  %551 = vmatprep.subr.bf16.mxu1 %v2203_v20 }
 0x159   :  { %511 = vmatpush1.bf16.msra.mxu0 %v2194_v17  ;;  %552 = vmatpush1.bf16.msra.mxu1 %v2215_v26 }
 0x15a   :  { %512 = vmatprep.subr.bf16.mxu0 %v2197_v18  ;;  %553 = vmatprep.subr.bf16.mxu1 %v2220_v29 }
 0x15d   :  { %513 = vmatpush1.bf16.msra.mxu0 %v2209_v24  ;;  %554 = vmatpush1.bf16.msra.mxu1 %v2224_v32 }
 0x15e   :  { %514 = vmatprep.subr.bf16.mxu0 %v2211_v25  ;;  %555 = vmatprep.subr.bf16.mxu1 %v2227_v33 }
 0x161   :  { %515 = vmatpush1.bf16.msra.mxu0 %v2217_v28  ;;  %556 = vmatpush1.bf16.msra.mxu1 %v2237_v35 }
 0x162   :  { %516 = vmatprep.subr.bf16.mxu0 %v2222_v30  ;;  %557 = vmatprep.subr.bf16.mxu1 %v2240_v37 }
 0x165   :  { %517 = vmatpush1.bf16.msra.mxu0 %v2231_v34  ;;  %558 = vmatpush1.bf16.msra.mxu1 %v2244_v39 }
 0x166   :  { %611 = vmatprep.subr.bf16.mxu0 %v2149_v1  ;;  %652 = vmatprep.subr.bf16.mxu1 %v2162_v6 }
 0x208   :  { %v427_v51 = vpop.f32.mrf.mxu0  ;;  %v468_v38 = vpop.f32.mrf.mxu1 }
 0x209   :  { %v428_v40 = vadd.f32 %v427_v51, %v2290_v61  ;;  %v469_v56 = vadd.f32 %v468_v38, %v2298_v47 }
 0x20a   :  { %v429_v41 = vpop.f32.mrf.mxu0  ;;  %v470_v42 = vpop.f32.mrf.mxu1 }
 0x20b   :  { %v1558_v43 = vmul.f32 -1.442695, %v428_v40  ;;  %v430_v44 = vadd.f32 %v429_v41, %v2292_v62  ;;  %v471_v53 = vadd.f32 %v470_v42, %v2296_v46 }
 0x20c   :  { %v431_v45 = vpop.f32.mrf.mxu0  ;;  %v472_v48 = vpop.f32.mrf.mxu1 }
 0x20d   :  { %1922 = vpow2.f32 %v1558_v43  ;;  %v1559_v49 = vmul.f32 -1.442695, %v430_v44  ;;  %v1560_v54 = vmul.f32 -1.442695, %v471_v53 }
 0x20e   :  { %v432_v50 = vpop.f32.mrf.mxu0  ;;  %v473_v52 = vpop.f32.mrf.mxu1 }
 0x20f   :  { %1924 = vpow2.f32 %v1559_v49 }
 0x210   :  { %1926 = vpow2.f32 %v1560_v54 }
 0x21a   :  { %v1923_v55 = vpop.eup %1922 }
 0x21b   :  { %v478_v58 = vadd.f32 1.0, %v1923_v55 }
 0x21c   :  { %v1925_v57 = vpop.eup %1924 }
 0x21d   :  { %1928 = vrcp.f32 %v478_v58  ;;  %v484_v60 = vadd.f32 1.0, %v1925_v57  ;;  %v1927_v63 = vpop.eup %1926 }
 0x21e   :  { %1930 = vtanh.f32 %v469_v56  ;;  %v491_v27 = vadd.f32 1.0, %v1927_v63 }
 0x21f   :  { %1932 = vrcp.f32 %v484_v60 }
 0x220   :  { %1934 = vrcp.f32 %v491_v27 }
 0x22a   :  { %v1929_v59 = vpop.eup %1928 }
 0x22b   :  { %v1931_v22 = vpop.eup %1930 }
 0x22c   :  { %v1933_v21 = vpop.eup %1932  ;;  %v495_v31 = vmul.f32 %v1931_v22, %v1929_v59 }
 0x22d   :  { %v494_v36 = vmul.f32 %v1933_v21, %v2303_v23  ;;  %v1935_v38 = vpop.eup %1934 }
 0x22f   :  { %v2345_v51 = vadd.f32 %v495_v31, %v494_v36 }
 0x231   :  { %1936 = vtanh.f32 %v2345_v51 }
 0x23e   :  { %v1937_v40 = vpop.eup %1936 }
 0x23f   :  { %v498_v41 = vmul.f32 %v1937_v40, %v1935_v38 }
 0x241   :  { %v499_v42 = vpack.c.bf16 %v498_v41, %v498_v41 }
 0x243   :  { %501 = vst [vmem:[#allocation2 + $0x2] sm:$0x1] %v499_v42  ;;  %535 = vmatmul.mubr.bf16.vlgmr.msra.gmra.mxu0 %v499_v42  ;;  %576 = vmatmul.mubr.bf16.vlgmr.msra.gmra.mxu1 %v499_v42 }
 0x244   :  { %612 = vmatpush1.bf16.msra.mxu0 %v2151_v2  ;;  %653 = vmatpush1.bf16.msra.mxu1 %v2164_v7 }
 0x245   :  { %613 = vmatprep.subr.bf16.mxu0 %v2154_v3  ;;  %654 = vmatprep.subr.bf16.mxu1 %v2174_v10 }
 0x246   :  { %643 = vmatprep.mubr.bf16.mxu0 %v2108_v0  ;;  %684 = vmatprep.mubr.bf16.mxu1 %v2108_v0 }
 0x248   :  { %614 = vmatpush1.bf16.msra.mxu0 %v2157_v4  ;;  %655 = vmatpush1.bf16.msra.mxu1 %v2176_v11 }
 0x249   :  { %615 = vmatprep.subr.bf16.mxu0 %v2160_v5  ;;  %656 = vmatprep.subr.bf16.mxu1 %v2184_v14 }
 0x24c   :  { %616 = vmatpush1.bf16.msra.mxu0 %v2167_v8  ;;  %657 = vmatpush1.bf16.msra.mxu1 %v2188_v15 }
 0x24d   :  { %617 = vmatprep.subr.bf16.mxu0 %v2171_v9  ;;  %658 = vmatprep.subr.bf16.mxu1 %v2191_v16 }
 0x250   :  { %618 = vmatpush1.bf16.msra.mxu0 %v2180_v12  ;;  %659 = vmatpush1.bf16.msra.mxu1 %v2200_v19 }
 0x251   :  { %619 = vmatprep.subr.bf16.mxu0 %v2182_v13  ;;  %660 = vmatprep.subr.bf16.mxu1 %v2203_v20 }
 0x254   :  { %620 = vmatpush1.bf16.msra.mxu0 %v2194_v17  ;;  %661 = vmatpush1.bf16.msra.mxu1 %v2215_v26 }
 0x255   :  { %621 = vmatprep.subr.bf16.mxu0 %v2197_v18  ;;  %662 = vmatprep.subr.bf16.mxu1 %v2220_v29 }
 0x258   :  { %622 = vmatpush1.bf16.msra.mxu0 %v2209_v24  ;;  %663 = vmatpush1.bf16.msra.mxu1 %v2224_v32 }
 0x259   :  { %623 = vmatprep.subr.bf16.mxu0 %v2211_v25  ;;  %664 = vmatprep.subr.bf16.mxu1 %v2227_v33 }
 0x25c   :  { %624 = vmatpush1.bf16.msra.mxu0 %v2217_v28  ;;  %665 = vmatpush1.bf16.msra.mxu1 %v2237_v35 }
 0x25d   :  { %625 = vmatprep.subr.bf16.mxu0 %v2222_v30  ;;  %666 = vmatprep.subr.bf16.mxu1 %v2240_v37 }
 0x260   :  { %626 = vmatpush1.bf16.msra.mxu0 %v2231_v34  ;;  %667 = vmatpush1.bf16.msra.mxu1 %v2244_v39 }
 0x261   :  { %720 = vmatprep.subr.bf16.mxu0 %v2149_v1  ;;  %761 = vmatprep.subr.bf16.mxu1 %v2162_v6 }
 0x303   :  { %v536_v23 = vpop.f32.mrf.mxu0  ;;  %v577_v43 = vpop.f32.mrf.mxu1 }
 0x304   :  { %v537_v44 = vadd.f32 %v536_v23, %v2290_v61  ;;  %v578_v63 = vadd.f32 %v577_v43, %v2298_v47 }
 0x305   :  { %v538_v45 = vpop.f32.mrf.mxu0  ;;  %v579_v48 = vpop.f32.mrf.mxu1 }
 0x306   :  { %v1561_v49 = vmul.f32 -1.442695, %v537_v44  ;;  %v539_v50 = vadd.f32 %v538_v45, %v2292_v62  ;;  %v580_v58 = vadd.f32 %v579_v48, %v2296_v46 }
 0x307   :  { %v540_v52 = vpop.f32.mrf.mxu0  ;;  %v581_v53 = vpop.f32.mrf.mxu1 }
 0x308   :  { %1938 = vpow2.f32 %v1561_v49  ;;  %v1562_v54 = vmul.f32 -1.442695, %v539_v50  ;;  %v1563_v57 = vmul.f32 -1.442695, %v580_v58 }
 0x309   :  { %v541_v55 = vpop.f32.mrf.mxu0  ;;  %v582_v56 = vpop.f32.mrf.mxu1 }
 0x30a   :  { %1940 = vpow2.f32 %v1562_v54 }
 0x30b   :  { %1942 = vpow2.f32 %v1563_v57 }
 0x315   :  { %v1939_v60 = vpop.eup %1938 }
 0x316   :  { %v587_v59 = vadd.f32 1.0, %v1939_v60 }
 0x317   :  { %v1941_v22 = vpop.eup %1940 }
 0x318   :  { %1944 = vrcp.f32 %v587_v59  ;;  %v593_v21 = vadd.f32 1.0, %v1941_v22  ;;  %v1943_v27 = vpop.eup %1942 }
 0x319   :  { %1946 = vtanh.f32 %v578_v63  ;;  %v600_v40 = vadd.f32 1.0, %v1943_v27 }
 0x31a   :  { %1948 = vrcp.f32 %v593_v21 }
 0x31b   :  { %1950 = vrcp.f32 %v600_v40 }
 0x325   :  { %v1945_v31 = vpop.eup %1944 }
 0x326   :  { %v1947_v36 = vpop.eup %1946 }
 0x327   :  { %v1949_v38 = vpop.eup %1948  ;;  %v604_v41 = vmul.f32 %v1947_v36, %v1945_v31 }
 0x328   :  { %v603_v42 = vmul.f32 %v1949_v38, %v2345_v51  ;;  %v1951_v43 = vpop.eup %1950 }
 0x32a   :  { %v2387_v23 = vadd.f32 %v604_v41, %v603_v42 }
 0x32c   :  { %1952 = vtanh.f32 %v2387_v23 }
 0x339   :  { %v1953_v44 = vpop.eup %1952 }
 0x33a   :  { %v607_v45 = vmul.f32 %v1953_v44, %v1951_v43 }
 0x33c   :  { %v608_v48 = vpack.c.bf16 %v607_v45, %v607_v45 }
 0x33e   :  { %610 = vst [vmem:[#allocation2 + $0x3] sm:$0x1] %v608_v48  ;;  %644 = vmatmul.mubr.bf16.vlgmr.msra.gmra.mxu0 %v608_v48  ;;  %685 = vmatmul.mubr.bf16.vlgmr.msra.gmra.mxu1 %v608_v48 }
 0x33f   :  { %721 = vmatpush1.bf16.msra.mxu0 %v2151_v2  ;;  %762 = vmatpush1.bf16.msra.mxu1 %v2164_v7 }
 0x340   :  { %722 = vmatprep.subr.bf16.mxu0 %v2154_v3  ;;  %763 = vmatprep.subr.bf16.mxu1 %v2174_v10 }
 0x341   :  { %752 = vmatprep.mubr.bf16.mxu0 %v2108_v0  ;;  %793 = vmatprep.mubr.bf16.mxu1 %v2108_v0 }
 0x343   :  { %723 = vmatpush1.bf16.msra.mxu0 %v2157_v4  ;;  %764 = vmatpush1.bf16.msra.mxu1 %v2176_v11 }
 0x344   :  { %724 = vmatprep.subr.bf16.mxu0 %v2160_v5  ;;  %765 = vmatprep.subr.bf16.mxu1 %v2184_v14 }
 0x347   :  { %725 = vmatpush1.bf16.msra.mxu0 %v2167_v8  ;;  %766 = vmatpush1.bf16.msra.mxu1 %v2188_v15 }
 0x348   :  { %726 = vmatprep.subr.bf16.mxu0 %v2171_v9  ;;  %767 = vmatprep.subr.bf16.mxu1 %v2191_v16 }
 0x34b   :  { %727 = vmatpush1.bf16.msra.mxu0 %v2180_v12  ;;  %768 = vmatpush1.bf16.msra.mxu1 %v2200_v19 }
 0x34c   :  { %728 = vmatprep.subr.bf16.mxu0 %v2182_v13  ;;  %769 = vmatprep.subr.bf16.mxu1 %v2203_v20 }
 0x34f   :  { %729 = vmatpush1.bf16.msra.mxu0 %v2194_v17  ;;  %770 = vmatpush1.bf16.msra.mxu1 %v2215_v26 }
 0x350   :  { %730 = vmatprep.subr.bf16.mxu0 %v2197_v18  ;;  %771 = vmatprep.subr.bf16.mxu1 %v2220_v29 }
 0x353   :  { %731 = vmatpush1.bf16.msra.mxu0 %v2209_v24  ;;  %772 = vmatpush1.bf16.msra.mxu1 %v2224_v32 }
 0x354   :  { %732 = vmatprep.subr.bf16.mxu0 %v2211_v25  ;;  %773 = vmatprep.subr.bf16.mxu1 %v2227_v33 }
 0x357   :  { %733 = vmatpush1.bf16.msra.mxu0 %v2217_v28  ;;  %774 = vmatpush1.bf16.msra.mxu1 %v2237_v35 }
 0x358   :  { %734 = vmatprep.subr.bf16.mxu0 %v2222_v30  ;;  %775 = vmatprep.subr.bf16.mxu1 %v2240_v37 }
 0x35b   :  { %735 = vmatpush1.bf16.msra.mxu0 %v2231_v34  ;;  %776 = vmatpush1.bf16.msra.mxu1 %v2244_v39 }
 0x35c   :  { %829 = vmatprep.subr.bf16.mxu0 %v2149_v1  ;;  %870 = vmatprep.subr.bf16.mxu1 %v2162_v6 }
 0x3fe   :  { %v645_v51 = vpop.f32.mrf.mxu0  ;;  %v686_v49 = vpop.f32.mrf.mxu1 }
 0x3ff   :  { %v646_v50 = vadd.f32 %v645_v51, %v2290_v61  ;;  %v687_v27 = vadd.f32 %v686_v49, %v2298_v47 }
 0x400   :  { %v647_v52 = vpop.f32.mrf.mxu0  ;;  %v688_v53 = vpop.f32.mrf.mxu1 }
 0x401   :  { %v1564_v54 = vmul.f32 -1.442695, %v646_v50  ;;  %v648_v55 = vadd.f32 %v647_v52, %v2292_v62  ;;  %v689_v59 = vadd.f32 %v688_v53, %v2296_v46 }
 0x402   :  { %v649_v56 = vpop.f32.mrf.mxu0  ;;  %v690_v58 = vpop.f32.mrf.mxu1 }
 0x403   :  { %1954 = vpow2.f32 %v1564_v54  ;;  %v1565_v57 = vmul.f32 -1.442695, %v648_v55  ;;  %v1566_v22 = vmul.f32 -1.442695, %v689_v59 }
 0x404   :  { %v650_v60 = vpop.f32.mrf.mxu0  ;;  %v691_v63 = vpop.f32.mrf.mxu1 }
 0x405   :  { %1956 = vpow2.f32 %v1565_v57 }
 0x406   :  { %1958 = vpow2.f32 %v1566_v22 }
 0x410   :  { %v1955_v21 = vpop.eup %1954 }
 0x411   :  { %v696_v31 = vadd.f32 1.0, %v1955_v21 }
 0x412   :  { %v1957_v36 = vpop.eup %1956 }
 0x413   :  { %1960 = vrcp.f32 %v696_v31  ;;  %v702_v38 = vadd.f32 1.0, %v1957_v36  ;;  %v1959_v40 = vpop.eup %1958 }
 0x414   :  { %1962 = vtanh.f32 %v687_v27  ;;  %v709_v44 = vadd.f32 1.0, %v1959_v40 }
 0x415   :  { %1964 = vrcp.f32 %v702_v38 }
 0x416   :  { %1966 = vrcp.f32 %v709_v44  ;;  %v2051_v44 = vld [vmem:[#allocation3 + $0xe8] ss:$16 sps:$4 sm:$0xff]  }
 0x420   :  { %v1961_v41 = vpop.eup %1960 }
 0x421   :  { %v1963_v42 = vpop.eup %1962 }
 0x422   :  { %v1965_v43 = vpop.eup %1964  ;;  %v713_v45 = vmul.f32 %v1963_v42, %v1961_v41 }
 0x423   :  { %v712_v48 = vmul.f32 %v1965_v43, %v2387_v23  ;;  %v1967_v49 = vpop.eup %1966  ;;  %v2050_v43 = vld [vmem:[#allocation3 + $0xe0] ss:$16 sps:$4 sm:$0xff]  }
 0x425   :  { %v2429_v51 = vadd.f32 %v713_v45, %v712_v48  ;;  %v2052_v45 = vld [vmem:[#allocation3 + $0xc4] ss:$16 sps:$4 sm:$0xff]   ;;  %v2053_v48 = vld [vmem:[#allocation3 + $0xcc] ss:$16 sps:$4 sm:$0xff]  }
 0x427   :  { %1968 = vtanh.f32 %v2429_v51 }
 0x434   :  { %v1969_v50 = vpop.eup %1968 }
 0x435   :  { %v716_v52 = vmul.f32 %v1969_v50, %v1967_v49  ;;  %v2055_v49 = vld [vmem:[#allocation3 + $0xc8] ss:$16 sps:$4 sm:$0xff]   ;;  %v2056_v50 = vld [vmem:[#allocation3 + $0xa4] ss:$16 sps:$4 sm:$0xff]  }
 0x437   :  { %v717_v53 = vpack.c.bf16 %v716_v52, %v716_v52  ;;  %v2057_v52 = vld [vmem:[#allocation3 + $0xa0] ss:$16 sps:$4 sm:$0xff]  }
 0x439   :  { %719 = vst [vmem:[#allocation2 + $0x4] sm:$0x1] %v717_v53  ;;  %753 = vmatmul.mubr.bf16.vlgmr.msra.gmra.mxu0 %v717_v53  ;;  %794 = vmatmul.mubr.bf16.vlgmr.msra.gmra.mxu1 %v717_v53  ;;  %v2058_v53 = vld [vmem:[#allocation3 + $0x84] ss:$16 sps:$4 sm:$0xff]  }
 0x43a   :  { %830 = vmatpush1.bf16.msra.mxu0 %v2151_v2  ;;  %871 = vmatpush1.bf16.msra.mxu1 %v2164_v7 }
 0x43b   :  { %831 = vmatprep.subr.bf16.mxu0 %v2154_v3  ;;  %872 = vmatprep.subr.bf16.mxu1 %v2174_v10 }
 0x43c   :  { %861 = vmatprep.mubr.bf16.mxu0 %v2108_v0  ;;  %902 = vmatprep.mubr.bf16.mxu1 %v2108_v0 }
 0x43e   :  { %832 = vmatpush1.bf16.msra.mxu0 %v2157_v4  ;;  %873 = vmatpush1.bf16.msra.mxu1 %v2176_v11 }
 0x43f   :  { %833 = vmatprep.subr.bf16.mxu0 %v2160_v5  ;;  %874 = vmatprep.subr.bf16.mxu1 %v2184_v14 }
 0x442   :  { %834 = vmatpush1.bf16.msra.mxu0 %v2167_v8  ;;  %875 = vmatpush1.bf16.msra.mxu1 %v2188_v15 }
 0x443   :  { %835 = vmatprep.subr.bf16.mxu0 %v2171_v9  ;;  %876 = vmatprep.subr.bf16.mxu1 %v2191_v16 }
 0x446   :  { %836 = vmatpush1.bf16.msra.mxu0 %v2180_v12  ;;  %877 = vmatpush1.bf16.msra.mxu1 %v2200_v19 }
 0x447   :  { %837 = vmatprep.subr.bf16.mxu0 %v2182_v13  ;;  %878 = vmatprep.subr.bf16.mxu1 %v2203_v20 }
 0x44a   :  { %838 = vmatpush1.bf16.msra.mxu0 %v2194_v17  ;;  %879 = vmatpush1.bf16.msra.mxu1 %v2215_v26 }
 0x44b   :  { %839 = vmatprep.subr.bf16.mxu0 %v2197_v18  ;;  %880 = vmatprep.subr.bf16.mxu1 %v2220_v29 }
 0x44e   :  { %840 = vmatpush1.bf16.msra.mxu0 %v2209_v24  ;;  %881 = vmatpush1.bf16.msra.mxu1 %v2224_v32 }
 0x44f   :  { %841 = vmatprep.subr.bf16.mxu0 %v2211_v25  ;;  %882 = vmatprep.subr.bf16.mxu1 %v2227_v33 }
 0x452   :  { %842 = vmatpush1.bf16.msra.mxu0 %v2217_v28  ;;  %883 = vmatpush1.bf16.msra.mxu1 %v2237_v35 }
 0x453   :  { %843 = vmatprep.subr.bf16.mxu0 %v2222_v30  ;;  %884 = vmatprep.subr.bf16.mxu1 %v2240_v37 }
 0x456   :  { %844 = vmatpush1.bf16.msra.mxu0 %v2231_v34  ;;  %885 = vmatpush1.bf16.msra.mxu1 %v2244_v39 }
 0x457   :  { %938 = vmatprep.subr.bf16.mxu0 %v2149_v1  ;;  %979 = vmatprep.subr.bf16.mxu1 %v2162_v6 }
 0x4f9   :  { %v754_v2 = vpop.f32.mrf.mxu0  ;;  %v795_v3 = vpop.f32.mrf.mxu1 }
 0x4fa   :  { %v755_v4 = vadd.f32 %v754_v2, %v2290_v61  ;;  %v796_v55 = vadd.f32 %v795_v3, %v2298_v47  ;;  %v2059_v2 = vld [vmem:[#allocation3 + $0x80] ss:$16 sps:$4 sm:$0xff]  }
 0x4fb   :  { %v756_v5 = vpop.f32.mrf.mxu0  ;;  %v797_v7 = vpop.f32.mrf.mxu1 }
 0x4fc   :  { %v1567_v8 = vmul.f32 -1.442695, %v755_v4  ;;  %v757_v9 = vadd.f32 %v756_v5, %v2292_v62  ;;  %v798_v1 = vadd.f32 %v797_v7, %v2296_v46 }
 0x4fd   :  { %v758_v10 = vpop.f32.mrf.mxu0  ;;  %v799_v11 = vpop.f32.mrf.mxu1 }
 0x4fe   :  { %1970 = vpow2.f32 %v1567_v8  ;;  %v1568_v12 = vmul.f32 -1.442695, %v757_v9  ;;  %v1569_v54 = vmul.f32 -1.442695, %v798_v1 }
 0x4ff   :  { %v759_v13 = vpop.f32.mrf.mxu0  ;;  %v800_v23 = vpop.f32.mrf.mxu1 }
 0x500   :  { %1972 = vpow2.f32 %v1568_v12 }
 0x501   :  { %1974 = vpow2.f32 %v1569_v54  ;;  %v2508_v54 = vld [vmem:[%s2719_s3 + $0x38] sm:$0xff]  }
 0x50b   :  { %v1971_v6 = vpop.eup %1970 }
 0x50c   :  { %v805_v56 = vadd.f32 1.0, %v1971_v6 }
 0x50d   :  { %v1973_v58 = vpop.eup %1972 }
 0x50e   :  { %1976 = vrcp.f32 %v805_v56  ;;  %v811_v57 = vadd.f32 1.0, %v1973_v58  ;;  %v1975_v60 = vpop.eup %1974  ;;  %v2528_v56 = vld [vmem:[%s2719_s3 + $0x28] sm:$0xff]   ;;  %v2537_v58 = vld [vmem:[%s2719_s3 + $0x20] sm:$0xff]  }
 0x50f   :  { %1978 = vtanh.f32 %v796_v55  ;;  %v818_v21 = vadd.f32 1.0, %v1975_v60  ;;  %v2515_v55 = vld [vmem:[%s2719_s3 + $0x30] sm:$0xff]  }
 0x510   :  { %1980 = vrcp.f32 %v811_v57  ;;  %v2546_v57 = vld [vmem:[%s2719_s3 + $0x18] sm:$0xff]   ;;  %v2555_v60 = vld [vmem:[%s2719_s3 + $0x10] sm:$0xff]  }
 0x511   :  { %1982 = vrcp.f32 %v818_v21  ;;  %v1048_v21 = vld [vmem:[#allocation2 + $0x1] sm:$0x1] }
 0x51b   :  { %v1977_v63 = vpop.eup %1976 }
 0x51c   :  { %v1979_v59 = vpop.eup %1978 }
 0x51d   :  { %v1981_v22 = vpop.eup %1980  ;;  %v822_v27 = vmul.f32 %v1979_v59, %v1977_v63  ;;  %v2564_v63 = vld [vmem:[%s2719_s3 + $0x8] sm:$0xff]   ;;  %v2573_v59 = vld [vmem:[%s2719_s3] sm:$0xff]  }
 0x51e   :  { %v821_v31 = vmul.f32 %v1981_v22, %v2429_v51  ;;  %v1983_v38 = vpop.eup %1982  ;;  %v2054_v51 = vld [vmem:[#allocation3 + $0xc0] ss:$16 sps:$4 sm:$0xff]   ;;  %v1047_v22 = vld [vmem:[#allocation2] sm:$0x1] }
 0x520   :  { %v2471_v36 = vadd.f32 %v822_v27, %v821_v31  ;;  %v1049_v27 = vld [vmem:[#allocation2 + $0x2] sm:$0x1]  ;;  %v1050_v31 = vld [vmem:[#allocation2 + $0x3] sm:$0x1] }
 0x522   :  { %1984 = vtanh.f32 %v2471_v36 }
 0x52f   :  { %v1985_v40 = vpop.eup %1984 }
 0x530   :  { %v825_v41 = vmul.f32 %v1985_v40, %v1983_v38 }
 0x532   :  { %v826_v42 = vpack.c.bf16 %v825_v41, %v825_v41 }
 0x534   :  { %828 = vst [vmem:[#allocation2 + $0x5] sm:$0x1] %v826_v42  ;;  %862 = vmatmul.mubr.bf16.vlgmr.msra.gmra.mxu0 %v826_v42  ;;  %903 = vmatmul.mubr.bf16.vlgmr.msra.gmra.mxu1 %v826_v42 }
 0x535   :  { %939 = vmatpush1.bf16.msra.mxu0 %v2050_v43  ;;  %980 = vmatpush1.bf16.msra.mxu1 %v2051_v44 }
 0x536   :  { %940 = vmatprep.subr.bf16.mxu0 %v2052_v45  ;;  %981 = vmatprep.subr.bf16.mxu1 %v2053_v48 }
 0x537   :  { %970 = vmatprep.mubr.bf16.mxu0 %v2108_v0  ;;  %1011 = vmatprep.mubr.bf16.mxu1 %v2108_v0  ;;  %v2060_v0 = vld [vmem:[#allocation3 + $0x64] ss:$16 sps:$4 sm:$0xff]  }
 0x539   :  { %941 = vmatpush1.bf16.msra.mxu0 %v2054_v51  ;;  %982 = vmatpush1.bf16.msra.mxu1 %v2055_v49 }
 0x53a   :  { %942 = vmatprep.subr.bf16.mxu0 %v2056_v50  ;;  %983 = vmatprep.subr.bf16.mxu1 %v2184_v14  ;;  %v2109_v14 = vmov 0.0  }
 0x53b   :  { %v1052_v38 = vld [vmem:[#allocation2 + $0x5] sm:$0x1] }
 0x53d   :  { %943 = vmatpush1.bf16.msra.mxu0 %v2057_v52  ;;  %984 = vmatpush1.bf16.msra.mxu1 %v2188_v15 }
 0x53e   :  { %944 = vmatprep.subr.bf16.mxu0 %v2058_v53  ;;  %985 = vmatprep.subr.bf16.mxu1 %v2191_v16 }
 0x541   :  { %945 = vmatpush1.bf16.msra.mxu0 %v2059_v2  ;;  %986 = vmatpush1.bf16.msra.mxu1 %v2200_v19 }
 0x542   :  { %946 = vmatprep.subr.bf16.mxu0 %v2060_v0  ;;  %987 = vmatprep.subr.bf16.mxu1 %v2203_v20 }
 0x545   :  { %947 = vmatpush1.bf16.msra.mxu0 %v2194_v17  ;;  %988 = vmatpush1.bf16.msra.mxu1 %v2215_v26 }
 0x546   :  { %948 = vmatprep.subr.bf16.mxu0 %v2197_v18  ;;  %989 = vmatprep.subr.bf16.mxu1 %v2220_v29 }
 0x549   :  { %949 = vmatpush1.bf16.msra.mxu0 %v2209_v24  ;;  %990 = vmatpush1.bf16.msra.mxu1 %v2224_v32 }
 0x54a   :  { %950 = vmatprep.subr.bf16.mxu0 %v2211_v25  ;;  %991 = vmatprep.subr.bf16.mxu1 %v2227_v33 }
 0x54d   :  { %951 = vmatpush1.bf16.msra.mxu0 %v2217_v28  ;;  %992 = vmatpush1.bf16.msra.mxu1 %v2237_v35 }
 0x54e   :  { %952 = vmatprep.subr.bf16.mxu0 %v2222_v30  ;;  %993 = vmatprep.subr.bf16.mxu1 %v2240_v37 }
 0x551   :  { %953 = vmatpush1.bf16.msra.mxu0 %v2231_v34  ;;  %994 = vmatpush1.bf16.msra.mxu1 %v2244_v39 }
 0x552   :  { %1665 = vmatprep.subr.bf16.mxu0 %v2109_v14  ;;  %1685 = vmatprep.subr.bf16.mxu1 %v2109_v14 }
 0x5f4   :  { %v863_v15 = vpop.f32.mrf.mxu0  ;;  %v904_v16 = vpop.f32.mrf.mxu1 }
 0x5f5   :  { %v864_v17 = vadd.f32 %v863_v15, %v2290_v61  ;;  %v905_v35 = vadd.f32 %v904_v16, %v2298_v47 }
 0x5f6   :  { %v865_v18 = vpop.f32.mrf.mxu0  ;;  %v906_v19 = vpop.f32.mrf.mxu1 }
 0x5f7   :  { %v1570_v20 = vmul.f32 -1.442695, %v864_v17  ;;  %v866_v24 = vadd.f32 %v865_v18, %v2292_v62  ;;  %v907_v32 = vadd.f32 %v906_v19, %v2296_v46 }
 0x5f8   :  { %v867_v25 = vpop.f32.mrf.mxu0  ;;  %v908_v26 = vpop.f32.mrf.mxu1 }
 0x5f9   :  { %1986 = vpow2.f32 %v1570_v20  ;;  %v1571_v28 = vmul.f32 -1.442695, %v866_v24  ;;  %v1572_v33 = vmul.f32 -1.442695, %v907_v32 }
 0x5fa   :  { %v868_v29 = vpop.f32.mrf.mxu0  ;;  %v909_v30 = vpop.f32.mrf.mxu1 }
 0x5fb   :  { %1988 = vpow2.f32 %v1571_v28 }
 0x5fc   :  { %1990 = vpow2.f32 %v1572_v33 }
 0x606   :  { %v1987_v34 = vpop.eup %1986 }
 0x607   :  { %v914_v37 = vadd.f32 1.0, %v1987_v34 }
 0x608   :  { %v1989_v39 = vpop.eup %1988 }
 0x609   :  { %1992 = vrcp.f32 %v914_v37  ;;  %v920_v3 = vadd.f32 1.0, %v1989_v39  ;;  %v1991_v4 = vpop.eup %1990 }
 0x60a   :  { %1994 = vtanh.f32 %v905_v35  ;;  %v927_v9 = vadd.f32 1.0, %v1991_v4 }
 0x60b   :  { %1996 = vrcp.f32 %v920_v3 }
 0x60c   :  { %1998 = vrcp.f32 %v927_v9 }
 0x616   :  { %v1993_v5 = vpop.eup %1992 }
 0x617   :  { %v1995_v7 = vpop.eup %1994 }
 0x618   :  { %v1997_v8 = vpop.eup %1996  ;;  %v931_v10 = vmul.f32 %v1995_v7, %v1993_v5 }
 0x619   :  { %v930_v11 = vmul.f32 %v1997_v8, %v2471_v36  ;;  %v1999_v13 = vpop.eup %1998  ;;  %v1051_v36 = vld [vmem:[#allocation2 + $0x4] sm:$0x1] }
 0x61b   :  { %v2502_v12 = vadd.f32 %v931_v10, %v930_v11 }
 0x61d   :  { %2000 = vtanh.f32 %v2502_v12 }
 0x62a   :  { %v2001_v23 = vpop.eup %2000 }
 0x62b   :  { %v934_v1 = vmul.f32 %v2001_v23, %v1999_v13 }
 0x62d   :  { %v935_v6 = vpack.c.bf16 %v934_v1, %v934_v1 }
 0x62f   :  { %937 = vst [vmem:[#allocation2 + $0x6] sm:$0x1] %v935_v6  ;;  %971 = vmatmul.mubr.bf16.vlgmr.msra.gmra.mxu0 %v935_v6  ;;  %1012 = vmatmul.mubr.bf16.vlgmr.msra.gmra.mxu1 %v935_v6 }
 0x630   :  { %1666 = vmatpush3.bf16.msra.mxu0 %v2508_v54  ;;  %1686 = vmatpush3.bf16.msra.mxu1 %v2508_v54 }
 0x631   :  { %1667 = vmatprep.subr.bf16.mxu0 %v2109_v14  ;;  %1687 = vmatprep.subr.bf16.mxu1 %v2109_v14 }
 0x632   :  { %1701 = vmatprep.mubr.msk.bf16.mxu1 %vm2110_vm0, %v2109_v14  ;;  %1681 = vmatprep.mubr.msk.bf16.mxu0 %vm2110_vm0, %v2109_v14 }
 0x634   :  { %1668 = vmatpush3.bf16.msra.mxu0 %v2515_v55  ;;  %1688 = vmatpush3.bf16.msra.mxu1 %v2515_v55 }
 0x635   :  { %1669 = vmatprep.subr.bf16.mxu0 %v2109_v14  ;;  %1689 = vmatprep.subr.bf16.mxu1 %v2109_v14 }
 0x636   :  { %v1053_v40 = vld [vmem:[#allocation2 + $0x6] sm:$0x1] }
 0x638   :  { %1670 = vmatpush3.bf16.msra.mxu0 %v2528_v56  ;;  %1690 = vmatpush3.bf16.msra.mxu1 %v2528_v56 }
 0x639   :  { %1671 = vmatprep.subr.bf16.mxu0 %v2109_v14  ;;  %1691 = vmatprep.subr.bf16.mxu1 %v2109_v14 }
 0x63c   :  { %1672 = vmatpush3.bf16.msra.mxu0 %v2537_v58  ;;  %1692 = vmatpush3.bf16.msra.mxu1 %v2537_v58 }
 0x63d   :  { %1673 = vmatprep.subr.bf16.mxu0 %v2109_v14  ;;  %1693 = vmatprep.subr.bf16.mxu1 %v2109_v14 }
 0x640   :  { %1674 = vmatpush3.bf16.msra.mxu0 %v2546_v57  ;;  %1694 = vmatpush3.bf16.msra.mxu1 %v2546_v57 }
 0x641   :  { %1675 = vmatprep.subr.bf16.mxu0 %v2109_v14  ;;  %1695 = vmatprep.subr.bf16.mxu1 %v2109_v14 }
 0x644   :  { %1676 = vmatpush3.bf16.msra.mxu0 %v2555_v60  ;;  %1696 = vmatpush3.bf16.msra.mxu1 %v2555_v60 }
 0x645   :  { %1677 = vmatprep.subr.bf16.mxu0 %v2109_v14  ;;  %1697 = vmatprep.subr.bf16.mxu1 %v2109_v14 }
 0x648   :  { %1678 = vmatpush3.bf16.msra.mxu0 %v2564_v63  ;;  %1698 = vmatpush3.bf16.msra.mxu1 %v2564_v63 }
 0x649   :  { %1679 = vmatprep.subr.bf16.mxu0 %v2109_v14  ;;  %1699 = vmatprep.subr.bf16.mxu1 %v2109_v14 }
 0x64c   :  { %1680 = vmatpush3.bf16.msra.mxu0 %v2573_v59  ;;  %1700 = vmatpush3.bf16.msra.mxu1 %v2573_v59 }
 0x64d   :  { %1705 = vmatprep.subr.bf16.mxu0 %v2109_v14  ;;  %1725 = vmatprep.subr.bf16.mxu1 %v2109_v14 }
 0x64f   :  { %1702 = vmatmul.mubr.bf16.vlgmr.msra.gmra.mxu1 %v1048_v21  ;;  %1682 = vmatmul.mubr.bf16.vlgmr.msra.gmra.mxu0 %v1047_v22 }
 0x650   :  { %1706 = vmatpush3.bf16.msra.mxu0 %v2508_v54  ;;  %1726 = vmatpush3.bf16.msra.mxu1 %v2508_v54 }
 0x651   :  { %1707 = vmatprep.subr.bf16.mxu0 %v2109_v14  ;;  %1727 = vmatprep.subr.bf16.mxu1 %v2109_v14 }
 0x652   :  { %1721 = vmatprep.mubr.msk.bf16.mxu0 %vm2110_vm0, %v2109_v14  ;;  %1741 = vmatprep.mubr.msk.bf16.mxu1 %vm2110_vm0, %v2109_v14 }
 0x654   :  { %1708 = vmatpush3.bf16.msra.mxu0 %v2515_v55  ;;  %1728 = vmatpush3.bf16.msra.mxu1 %v2515_v55 }
 0x655   :  { %1709 = vmatprep.subr.bf16.mxu0 %v2109_v14  ;;  %1729 = vmatprep.subr.bf16.mxu1 %v2109_v14 }
 0x658   :  { %1710 = vmatpush3.bf16.msra.mxu0 %v2528_v56  ;;  %1730 = vmatpush3.bf16.msra.mxu1 %v2528_v56 }
 0x659   :  { %1711 = vmatprep.subr.bf16.mxu0 %v2109_v14  ;;  %1731 = vmatprep.subr.bf16.mxu1 %v2109_v14 }
 0x65c   :  { %1712 = vmatpush3.bf16.msra.mxu0 %v2537_v58  ;;  %1732 = vmatpush3.bf16.msra.mxu1 %v2537_v58 }
 0x65d   :  { %1713 = vmatprep.subr.bf16.mxu0 %v2109_v14  ;;  %1733 = vmatprep.subr.bf16.mxu1 %v2109_v14 }
 0x660   :  { %1714 = vmatpush3.bf16.msra.mxu0 %v2546_v57  ;;  %1734 = vmatpush3.bf16.msra.mxu1 %v2546_v57 }
 0x661   :  { %1715 = vmatprep.subr.bf16.mxu0 %v2109_v14  ;;  %1735 = vmatprep.subr.bf16.mxu1 %v2109_v14 }
 0x664   :  { %1716 = vmatpush3.bf16.msra.mxu0 %v2555_v60  ;;  %1736 = vmatpush3.bf16.msra.mxu1 %v2555_v60 }
 0x665   :  { %1717 = vmatprep.subr.bf16.mxu0 %v2109_v14  ;;  %1737 = vmatprep.subr.bf16.mxu1 %v2109_v14 }
 0x668   :  { %1718 = vmatpush3.bf16.msra.mxu0 %v2564_v63  ;;  %1738 = vmatpush3.bf16.msra.mxu1 %v2564_v63 }
 0x669   :  { %1719 = vmatprep.subr.bf16.mxu0 %v2109_v14  ;;  %1739 = vmatprep.subr.bf16.mxu1 %v2109_v14 }
 0x66c   :  { %1720 = vmatpush3.bf16.msra.mxu0 %v2573_v59  ;;  %1740 = vmatpush3.bf16.msra.mxu1 %v2573_v59 }
 0x66d   :  { %1745 = vmatprep.subr.bf16.mxu0 %v2109_v14  ;;  %1765 = vmatprep.subr.bf16.mxu1 %v2109_v14 }
 0x66f   :  { %1722 = vmatmul.mubr.bf16.vlgmr.msra.gmra.mxu0 %v1049_v27  ;;  %1742 = vmatmul.mubr.bf16.vlgmr.msra.gmra.mxu1 %v1050_v31 }
 0x670   :  { %1746 = vmatpush3.bf16.msra.mxu0 %v2508_v54  ;;  %1766 = vmatpush3.bf16.msra.mxu1 %v2508_v54 }
 0x671   :  { %1747 = vmatprep.subr.bf16.mxu0 %v2109_v14  ;;  %1767 = vmatprep.subr.bf16.mxu1 %v2109_v14 }
 0x672   :  { %1761 = vmatprep.mubr.msk.bf16.mxu0 %vm2110_vm0, %v2109_v14  ;;  %1781 = vmatprep.mubr.msk.bf16.mxu1 %vm2110_vm0, %v2109_v14 }
 0x674   :  { %1748 = vmatpush3.bf16.msra.mxu0 %v2515_v55  ;;  %1768 = vmatpush3.bf16.msra.mxu1 %v2515_v55 }
 0x675   :  { %1749 = vmatprep.subr.bf16.mxu0 %v2109_v14  ;;  %1769 = vmatprep.subr.bf16.mxu1 %v2109_v14 }
 0x678   :  { %1750 = vmatpush3.bf16.msra.mxu0 %v2528_v56  ;;  %1770 = vmatpush3.bf16.msra.mxu1 %v2528_v56 }
 0x679   :  { %1751 = vmatprep.subr.bf16.mxu0 %v2109_v14  ;;  %1771 = vmatprep.subr.bf16.mxu1 %v2109_v14 }
 0x67c   :  { %1752 = vmatpush3.bf16.msra.mxu0 %v2537_v58  ;;  %1772 = vmatpush3.bf16.msra.mxu1 %v2537_v58 }
 0x67d   :  { %1753 = vmatprep.subr.bf16.mxu0 %v2109_v14  ;;  %1773 = vmatprep.subr.bf16.mxu1 %v2109_v14 }
 0x680   :  { %1754 = vmatpush3.bf16.msra.mxu0 %v2546_v57  ;;  %1774 = vmatpush3.bf16.msra.mxu1 %v2546_v57 }
 0x681   :  { %1755 = vmatprep.subr.bf16.mxu0 %v2109_v14  ;;  %1775 = vmatprep.subr.bf16.mxu1 %v2109_v14 }
 0x684   :  { %1756 = vmatpush3.bf16.msra.mxu0 %v2555_v60  ;;  %1776 = vmatpush3.bf16.msra.mxu1 %v2555_v60 }
 0x685   :  { %1757 = vmatprep.subr.bf16.mxu0 %v2109_v14  ;;  %1777 = vmatprep.subr.bf16.mxu1 %v2109_v14 }
 0x688   :  { %1758 = vmatpush3.bf16.msra.mxu0 %v2564_v63  ;;  %1778 = vmatpush3.bf16.msra.mxu1 %v2564_v63 }
 0x689   :  { %1759 = vmatprep.subr.bf16.mxu0 %v2109_v14  ;;  %1779 = vmatprep.subr.bf16.mxu1 %v2109_v14 }
 0x68c   :  { %1760 = vmatpush3.bf16.msra.mxu0 %v2573_v59  ;;  %1780 = vmatpush3.bf16.msra.mxu1 %v2573_v59 }
 0x68d   :  { %1785 = vmatprep.subr.bf16.mxu0 %v2109_v14  ;;  %1805 = vmatprep.subr.bf16.mxu1 %v2109_v14 }
 0x68f   :  { %1762 = vmatmul.mubr.bf16.vlgmr.msra.gmra.mxu0 %v1051_v36  ;;  %1782 = vmatmul.mubr.bf16.vlgmr.msra.gmra.mxu1 %v1052_v38 }
 0x690   :  { %1786 = vmatpush3.bf16.msra.mxu0 %v2508_v54  ;;  %1801 = vmatprep.mubr.msk.bf16.mxu0 %vm2110_vm0, %v2109_v14 }
 0x691   :  { %1787 = vmatprep.subr.bf16.mxu0 %v2109_v14  ;;  %1806 = vmatpush3.bf16.msra.mxu1 %v2508_v54 }
 0x692   :  { %1807 = vmatprep.subr.bf16.mxu1 %v2109_v14  ;;  %1821 = vmatprep.mubr.msk.bf16.mxu1 %vm2110_vm0, %v2109_v14 }
 0x694   :  { %1788 = vmatpush3.bf16.msra.mxu0 %v2515_v55 }
 0x695   :  { %1789 = vmatprep.subr.bf16.mxu0 %v2109_v14  ;;  %1808 = vmatpush3.bf16.msra.mxu1 %v2515_v55 }
 0x696   :  { %1809 = vmatprep.subr.bf16.mxu1 %v2109_v14 }
 0x698   :  { %1790 = vmatpush3.bf16.msra.mxu0 %v2528_v56 }
 0x699   :  { %1791 = vmatprep.subr.bf16.mxu0 %v2109_v14  ;;  %1810 = vmatpush3.bf16.msra.mxu1 %v2528_v56 }
 0x69a   :  { %1811 = vmatprep.subr.bf16.mxu1 %v2109_v14 }
 0x69c   :  { %1792 = vmatpush3.bf16.msra.mxu0 %v2537_v58 }
 0x69d   :  { %1793 = vmatprep.subr.bf16.mxu0 %v2109_v14  ;;  %1812 = vmatpush3.bf16.msra.mxu1 %v2537_v58 }
 0x69e   :  { %1813 = vmatprep.subr.bf16.mxu1 %v2109_v14 }
 0x6a0   :  { %1794 = vmatpush3.bf16.msra.mxu0 %v2546_v57 }
 0x6a1   :  { %1795 = vmatprep.subr.bf16.mxu0 %v2109_v14  ;;  %1814 = vmatpush3.bf16.msra.mxu1 %v2546_v57 }
 0x6a2   :  { %1815 = vmatprep.subr.bf16.mxu1 %v2109_v14 }
 0x6a4   :  { %1796 = vmatpush3.bf16.msra.mxu0 %v2555_v60 }
 0x6a5   :  { %1797 = vmatprep.subr.bf16.mxu0 %v2109_v14  ;;  %1816 = vmatpush3.bf16.msra.mxu1 %v2555_v60 }
 0x6a6   :  { %1817 = vmatprep.subr.bf16.mxu1 %v2109_v14 }
 0x6a8   :  { %1798 = vmatpush3.bf16.msra.mxu0 %v2564_v63 }
 0x6a9   :  { %1799 = vmatprep.subr.bf16.mxu0 %v2109_v14  ;;  %1818 = vmatpush3.bf16.msra.mxu1 %v2564_v63 }
 0x6aa   :  { %1819 = vmatprep.subr.bf16.mxu1 %v2109_v14 }
 0x6ac   :  { %1800 = vmatpush3.bf16.msra.mxu0 %v2573_v59 }
 0x6ad   :  { %1820 = vmatpush3.bf16.msra.mxu1 %v2573_v59 }
 0x6af   :  { %1802 = vmatmul.mubr.bf16.vlgmr.msra.gmra.mxu0 %v1053_v40 }
 0x6ef   :  { %v972_v41 = vpop.f32.mrf.mxu0  ;;  %v1013_v42 = vpop.f32.mrf.mxu1 }
 0x6f0   :  { %v973_v43 = vadd.f32 %v972_v41, %v2290_v61  ;;  %v1014_v16 = vadd.f32 %v1013_v42, %v2298_v47 }
 0x6f1   :  { %v974_v44 = vpop.f32.mrf.mxu0  ;;  %v1015_v45 = vpop.f32.mrf.mxu1 }
 0x6f2   :  { %v1573_v48 = vmul.f32 -1.442695, %v973_v43  ;;  %v975_v51 = vadd.f32 %v974_v44, %v2292_v62  ;;  %v1016_v0 = vadd.f32 %v1015_v45, %v2296_v46  ;;  %v2694_v62 = vld [vmem:[%s2720_s4] ss:$0 sm:$0xff]  ;;  %s2111_s4 = smov [#allocation6]  }
 0x6f3   :  { %v976_v49 = vpop.f32.mrf.mxu0  ;;  %v1017_v50 = vpop.f32.mrf.mxu1  ;;  %s1508_s18 = sshll.u32 %s2111_s4, 4  ;;  %s1509_s18 = int_to_ptr.vmem [resolvable:$true] %s1508_s18 }
 0x6f4   :  { %2002 = vpow2.f32 %v1573_v48  ;;  %v1574_v52 = vmul.f32 -1.442695, %v975_v51  ;;  %v1575_v14 = vmul.f32 -1.442695, %v1016_v0  ;;  %s2081_s19 = scalar_lea.vmem %s1509_s18, 256  ;;  %p2086_p6 = scmp.lt.s32.totalorder %s1509_s18, %s1509_s18 }
 0x6f5   :  { %v977_v53 = vpop.f32.mrf.mxu0  ;;  %v1018_v2 = vpop.f32.mrf.mxu1  ;;  %p2082_p5 = scmp.ne.s32.totalorder %s1509_s18, %s2081_s19  ;;  %p2087_p7 = scmp.lt.s32.totalorder %s2081_s19, %s2081_s19 }
 0x6f6   :  { %2004 = vpow2.f32 %v1574_v52 }
 0x6f7   :  { %2006 = vpow2.f32 %v1575_v14  ;;  %p2088_p8 = por %p2087_p7, %p2086_p6 }
 0x6f9   :  { %p2089_p9 = pnand %p2088_p8, %p2082_p5 }
 0x701   :  { %v2003_v15 = vpop.eup %2002 }
 0x702   :  { %v1023_v17 = vadd.f32 1.0, %v2003_v15 }
 0x703   :  { %v2005_v61 = vpop.eup %2004 }
 0x704   :  { %2008 = vrcp.f32 %v1023_v17  ;;  %v1029_v18 = vadd.f32 1.0, %v2005_v61  ;;  %v2007_v24 = vpop.eup %2006 }
 0x705   :  { %2010 = vtanh.f32 %v1014_v16  ;;  %v1036_v34 = vadd.f32 1.0, %v2007_v24 }
 0x706   :  { %2012 = vrcp.f32 %v1029_v18 }
 0x70f   :  { %v1200_v19 = vpop.f32.mrf.mxu1  ;;  %v1160_v20 = vpop.f32.mrf.mxu0 }
 0x710   :  { %v1201_v46 = vadd.f32 %v2694_v62, %v1200_v19  ;;  %v1161_v25 = vadd.f32 %v2694_v62, %v1160_v20 }
 0x711   :  { %v2009_v47 = vpop.eup %2008  ;;  %v1703_v26 = vpop.f32.mrf.mxu1 }
 0x712   :  { %v1683_v28 = vpop.f32.mrf.mxu0  ;;  %v2011_v29 = vpop.eup %2010  ;;  %v1586_v30 = vmul.f32 -1.442695, %v1201_v46  ;;  %v1585_v32 = vmul.f32 -1.442695, %v1161_v25 }
 0x713   :  { %v2013_v33 = vpop.eup %2012  ;;  %v1203_v35 = vpop.f32.mrf.mxu1  ;;  %v1040_v39 = vmul.f32 %v2011_v29, %v2009_v47 }
 0x714   :  { %v1163_v37 = vpop.f32.mrf.mxu0  ;;  %v1039_v3 = vmul.f32 %v2013_v33, %v2502_v12  ;;  %2014 = vpow2.f32 %v1586_v30 }
 0x715   :  { %v1704_v4 = vpop.f32.mrf.mxu1  ;;  %2016 = vpow2.f32 %v1585_v32 }
 0x716   :  { %v1684_v5 = vpop.f32.mrf.mxu0  ;;  %v1041_v7 = vadd.f32 %v1040_v39, %v1039_v3  ;;  %2018 = vrcp.f32 %v1036_v34 }
 0x718   :  { %2020 = vtanh.f32 %v1041_v7 }
 0x721   :  { %v2015_v8 = vpop.eup %2014 }
 0x722   :  { %v2017_v9 = vpop.eup %2016  ;;  %v1471_v10 = vadd.f32 1.0, %v2015_v8 }
 0x723   :  { %v1470_v11 = vadd.f32 1.0, %v2017_v9  ;;  %v2019_v13 = vpop.eup %2018 }
 0x724   :  { %2022 = vrcp.f32 %v1471_v10 }
 0x725   :  { %v2021_v23 = vpop.eup %2020  ;;  %2024 = vrcp.f32 %v1470_v11 }
 0x726   :  { %v1043_v1 = vmul.f32 %v2021_v23, %v2019_v13 }
 0x728   :  { %v1044_v54 = vpack.c.bf16 %v1043_v1, %v1043_v1 }
 0x72a   :  { %1046 = vst [vmem:[#allocation2 + $0x7] sm:$0x1] %v1044_v54 }
 0x72f   :  { %v1240_v6 = vpop.f32.mrf.mxu0  ;;  %v1280_v12 = vpop.f32.mrf.mxu1 }
 0x730   :  { %v1241_v55 = vadd.f32 %v2694_v62, %v1240_v6  ;;  %v1281_v56 = vadd.f32 %v2694_v62, %v1280_v12 }
 0x731   :  { %v2023_v58 = vpop.eup %2022  ;;  %v1723_v57 = vpop.f32.mrf.mxu0  ;;  %v1054_v63 = vld [vmem:[#allocation2 + $0x7] sm:$0x1] }
 0x732   :  { %v1743_v60 = vpop.f32.mrf.mxu1  ;;  %v2025_v59 = vpop.eup %2024  ;;  %v1587_v22 = vmul.f32 -1.442695, %v1241_v55  ;;  %v1588_v21 = vmul.f32 -1.442695, %v1281_v56  ;;  %1822 = vmatmul.mubr.bf16.vlgmr.msra.gmra.mxu1 %v1054_v63  ;;  %1496 = vst.msk [vmem:[#allocation6 + $0x2] sm:$0x3] %vm1494_vm1, %v2023_v58 }
 0x733   :  { %v1243_v27 = vpop.f32.mrf.mxu0  ;;  %1495 = vst.msk [vmem:[#allocation6] sm:$0x3] %vm1494_vm1, %v2025_v59 }
 0x734   :  { %v1283_v31 = vpop.f32.mrf.mxu1  ;;  %2026 = vpow2.f32 %v1587_v22 }
 0x735   :  { %2028 = vpow2.f32 %v1588_v21  ;;  %v1724_v36 = vpop.f32.mrf.mxu0 }
 0x736   :  { %v1744_v38 = vpop.f32.mrf.mxu1 }
 0x741   :  { %v2027_v40 = vpop.eup %2026 }
 0x742   :  { %v2029_v41 = vpop.eup %2028  ;;  %v1472_v42 = vadd.f32 1.0, %v2027_v40 }
 0x743   :  { %v1473_v43 = vadd.f32 1.0, %v2029_v41 }
 0x744   :  { %2030 = vrcp.f32 %v1472_v42 }
 0x745   :  { %2032 = vrcp.f32 %v1473_v43 }
 0x74f   :  { %v1320_v44 = vpop.f32.mrf.mxu0  ;;  %v1360_v45 = vpop.f32.mrf.mxu1 }
 0x750   :  { %v1321_v48 = vadd.f32 %v2694_v62, %v1320_v44  ;;  %v1361_v51 = vadd.f32 %v2694_v62, %v1360_v45 }
 0x751   :  { %v2031_v49 = vpop.eup %2030  ;;  %v1763_v50 = vpop.f32.mrf.mxu0 }
 0x752   :  { %v1783_v52 = vpop.f32.mrf.mxu1  ;;  %v2033_v53 = vpop.eup %2032  ;;  %v1589_v2 = vmul.f32 -1.442695, %v1321_v48  ;;  %v1590_v0 = vmul.f32 -1.442695, %v1361_v51  ;;  %1497 = vst.msk [vmem:[#allocation6 + $0x4] sm:$0x3] %vm1494_vm1, %v2031_v49 }
 0x753   :  { %v1323_v14 = vpop.f32.mrf.mxu0  ;;  %1498 = vst.msk [vmem:[#allocation6 + $0x6] sm:$0x3] %vm1494_vm1, %v2033_v53 }
 0x754   :  { %v1363_v15 = vpop.f32.mrf.mxu1  ;;  %2034 = vpow2.f32 %v1589_v2 }
 0x755   :  { %2036 = vpow2.f32 %v1590_v0  ;;  %v1764_v16 = vpop.f32.mrf.mxu0 }
 0x756   :  { %v1784_v17 = vpop.f32.mrf.mxu1 }
 0x761   :  { %v2035_v61 = vpop.eup %2034 }
 0x762   :  { %v2037_v18 = vpop.eup %2036  ;;  %v1474_v19 = vadd.f32 1.0, %v2035_v61 }
 0x763   :  { %v1475_v20 = vadd.f32 1.0, %v2037_v18 }
 0x764   :  { %2038 = vrcp.f32 %v1474_v19 }
 0x765   :  { %2040 = vrcp.f32 %v1475_v20 }
 0x76f   :  { %v1400_v24 = vpop.f32.mrf.mxu0 }
 0x770   :  { %v1401_v46 = vadd.f32 %v2694_v62, %v1400_v24 }
 0x771   :  { %v2039_v25 = vpop.eup %2038  ;;  %v1803_v47 = vpop.f32.mrf.mxu0 }
 0x772   :  { %v2041_v26 = vpop.eup %2040  ;;  %v1591_v28 = vmul.f32 -1.442695, %v1401_v46  ;;  %1499 = vst.msk [vmem:[#allocation6 + $0x8] sm:$0x3] %vm1494_vm1, %v2039_v25 }
 0x773   :  { %v1403_v29 = vpop.f32.mrf.mxu0  ;;  %1500 = vst.msk [vmem:[#allocation6 + $0xa] sm:$0x3] %vm1494_vm1, %v2041_v26 }
 0x774   :  { %2042 = vpow2.f32 %v1591_v28 }
 0x775   :  { %v1804_v30 = vpop.f32.mrf.mxu0 }
 0x781   :  { %v2043_v32 = vpop.eup %2042 }
 0x782   :  { %v1476_v33 = vadd.f32 1.0, %v2043_v32 }
 0x784   :  { %2044 = vrcp.f32 %v1476_v33 }
 0x791   :  { %v2045_v34 = vpop.eup %2044 }
 0x792   :  { %1501 = vst.msk [vmem:[#allocation6 + $0xc] sm:$0x3] %vm1494_vm1, %v2045_v34 }
 0x7f2   :  { %v1440_v35 = vpop.f32.mrf.mxu1 }
 0x7f3   :  { %v1441_v37 = vadd.f32 %v2694_v62, %v1440_v35 }
 0x7f4   :  { %v1823_v39 = vpop.f32.mrf.mxu1 }
 0x7f5   :  { %v1592_v3 = vmul.f32 -1.442695, %v1441_v37 }
 0x7f6   :  { %v1443_v4 = vpop.f32.mrf.mxu1 }
 0x7f7   :  { %2046 = vpow2.f32 %v1592_v3 }
 0x7f8   :  { %v1824_v5 = vpop.f32.mrf.mxu1 }
 0x804   :  { %v2047_v7 = vpop.eup %2046 }
 0x805   :  { %v1477_v8 = vadd.f32 1.0, %v2047_v7 }
 0x807   :  { %2048 = vrcp.f32 %v1477_v8 }
 0x814   :  { %v2049_v9 = vpop.eup %2048 }
 0x815   :  { %1502 = vst.msk [vmem:[#allocation6 + $0xe] sm:$0x3] %vm1494_vm1, %v2049_v9 }
 0x816   :  { %2092 = shalt.err (!%p2089_p9)
}
 0x817   :  { %s2112_s20 = smov 32   ;;  %s2113_s21 = smov 2  }
 0x818   :  { %1514 = dma.vmem_to_hbm [thread:$0]  %s1509_s18, 256, %s2721_s5, [#allocation5], %s2112_s20, %s2112_s20, %s2113_s21  }
 0x819   :  { %2103 = dma.done.wait [#allocation5], 256  }
 0x81a   :  { %2104 = vsyncadd [#allocation5], 4294967040 }
 0x81b   :  { %1518 = vsyncpa [#allocation4], 1 }
 0x81c   :  { %1519 = vsyncpa [#allocation5], 1 }

</bundles_post_ra>
